<compile_context>
chip_gen: v6e
topology: v6e:2x2x1
jax: 0.10.0
libtpu: 0.0.40
codegen_flags: <defaults>
</compile_context>

<pallas_src>
import jax
import jax.numpy as jnp
import numpy as np
from jax import lax
from jax.experimental import pallas as pl
from jax.experimental.pallas import tpu as pltpu

P_DIM = 3  # first 3 output lanes -> sigmoid "p"; remaining -> tanh + normalize "r"


def _make_lstm_kernel(num_layers, seq_len, batch_pad, hidden_size):
    L, T, B, H = num_layers, seq_len, batch_pad, hidden_size
    MM = jnp.bfloat16  # MXU operand dtype; accumulation / elementwise stay f32

    def kernel(*refs):
        # ---- unpack refs ---------------------------------------------------
        x_ref = refs[0]                                   # (T*B, D_in) bf16
        layer_refs = []
        idx = 1
        for _ in range(L):
            layer_refs.append((refs[idx], refs[idx + 1], refs[idx + 2]))
            idx += 3
        w_fc_ref, b_fc_ref = refs[idx], refs[idx + 1]     # (H,out) bf16, (1,out) f32
        y_ref = refs[idx + 2]                             # (B, out) f32 output

        # Read weights once; hoist bias broadcasts out of the time loop.
        w_ih = [layer_refs[l][0][...] for l in range(L)]              # (D_l,4H) bf16
        w_hh = [layer_refs[l][1][...] for l in range(L)]              # (H,4H)  bf16
        bias_raw = [layer_refs[l][2][...] for l in range(L)]          # (1,4H)  f32
        bias_b = [jnp.broadcast_to(bias_raw[l], (B, 4 * H)) for l in range(L)]

        # Layer 0: whole-sequence input projection hoisted out of the
        # recurrence (one (T*B,D)@(D,4H) MXU matmul feeds every timestep).
        gx0 = jnp.dot(x_ref[...], w_ih[0],
                      preferred_element_type=jnp.float32) + bias_raw[0]  # (T*B,4H)

        def sigmoid_t(x):      # one EUP pass (tanh) instead of exp + reciprocal
            return 0.5 * jnp.tanh(0.5 * x) + 0.5

        def cell(layer, gx_t, h_in, c_in):
            gates = gx_t + jnp.dot(h_in.astype(MM), w_hh[layer],
                                   preferred_element_type=jnp.float32)  # (B,4H)
            sg = sigmoid_t(gates)          # i | f | . | o
            tg = jnp.tanh(gates)           # . | . | g | .
            # Align f/g/o to the c/h lanes (block 0) via explicit XLU rolls.
            i_g = sg[:, 0:H]
            f_g = pltpu.roll(sg, 3 * H, axis=1)[:, 0:H]
            g_g = pltpu.roll(tg, 2 * H, axis=1)[:, 0:H]
            o_g = pltpu.roll(sg, 1 * H, axis=1)[:, 0:H]
            c_new = f_g * c_in + i_g * g_g
            h_new = o_g * jnp.tanh(c_new)
            return h_new, c_new

        h = [jnp.zeros((B, H), jnp.float32) for _ in range(L)]
        c = [jnp.zeros((B, H), jnp.float32) for _ in range(L)]

        # Wavefront over (layer, time).  Layers are traced high->low within a
        # wavefront step so layer l reads layer l-1's step-t output before it
        # is overwritten with step t+1; the layers' work inside one wavefront
        # step is independent and can co-issue.
        # TODO(synk): for larger T switch this full unroll to lax.fori_loop
        # (or a grid axis) to bound live ranges / compile time.
        for s in range(T + L - 1):
            for l in reversed(range(L)):
                t = s - l
                if 0 <= t < T:
                    if l == 0:
                        gx_t = gx0[t * B:(t + 1) * B, :]
                    else:
                        gx_t = jnp.dot(h[l - 1].astype(MM), w_ih[l],
                                       preferred_element_type=jnp.float32) + bias_b[l]
                    h[l], c[l] = cell(l, gx_t, h[l], c[l])
        # TODO(synk): stage W_hh in the MXU weight registers once per layer
        # (pltpu.matmul_push_rhs / matmul_acc_lhs / matmul_pop) instead of a
        # jnp.dot per step; kept jnp.dot for lowering robustness on v5e/v6e/v7x.

        # fc_u on the last timestep of the top layer + fused p/r epilogue:
        # sigmoid on lanes [0,3), tanh + L2-normalize on lanes [3, out).
        y = jnp.dot(h[L - 1].astype(MM), w_fc_ref[...],
                    preferred_element_type=jnp.float32) + b_fc_ref[...]    # (B,out)
        is_p = lax.broadcasted_iota(jnp.int32, y.shape, 1) < P_DIM
        sig_y = sigmoid_t(y)
        tanh_y = jnp.tanh(y)
        r_m = jnp.where(is_p, 0.0, tanh_y)
        inv_norm = lax.rsqrt(jnp.maximum(
            jnp.sum(r_m * r_m, axis=1, keepdims=True), 1e-24))   # == /max(||r||,1e-12)
        y_ref[...] = jnp.where(is_p, sig_y, tanh_y * inv_norm)

    return kernel


def lstm_forward_model(x, params):
    """x: (B, T, input_size) float32, batch-first like the PyTorch module."""
    B, T, D_in = x.shape
    layers = params["layers"]
    L = len(layers)
    H = layers[0][1].shape[1]            # w_hh: (4H, H)
    w_fc, b_fc = params["fc"]            # (out, H), (out,)
    out_size = w_fc.shape[0]

    # Pad batch to a full f32 sublane tile so every per-timestep row access in
    # the kernel is whole-tile; padded rows are dropped at the end.
    B_pad = ((B + 7) // 8) * 8

    # time-major, padded, flattened over (T, B_pad): row t*B_pad + b == x[b, t];
    # pre-cast to bf16 (MXU operand dtype) in the wrapper.
    x_t = jnp.transpose(x, (1, 0, 2))                      # (T, B, D_in)
    x_t = jnp.pad(x_t, ((0, 0), (0, B_pad - B), (0, 0)))
    x2d = x_t.reshape(T * B_pad, D_in).astype(jnp.bfloat16)

    flat = []
    for (w_ih, w_hh, b_ih, b_hh) in layers:
        flat.append(jnp.transpose(w_ih).astype(jnp.bfloat16))        # (D_l, 4H)
        flat.append(jnp.transpose(w_hh).astype(jnp.bfloat16))        # (H, 4H)
        flat.append(((b_ih + b_hh)[None, :]).astype(jnp.float32))    # (1, 4H)
    flat.append(jnp.transpose(w_fc).astype(jnp.bfloat16))            # (H, out)
    flat.append(b_fc[None, :].astype(jnp.float32))                   # (1, out)

    vmem = pl.BlockSpec(memory_space=pltpu.MemorySpace.VMEM)
    kernel = _make_lstm_kernel(L, T, B_pad, H)

    # TODO(synk): when T/B/H scale, tile the sequence behind a grid (BlockSpec
    # pipelining), add a "parallel" batch axis so both v7x TensorCores get
    # work, and set pltpu.CompilerParams(vmem_limit_bytes=...) for v7x's
    # 64 MiB VMEM.  Filling B toward 128-256 independent sequences is the
    # cheapest throughput win (MXU passes are nearly empty at B=2).
    y = pl.pallas_call(
        kernel,
        out_shape=jax.ShapeDtypeStruct((B_pad, out_size), jnp.float32),
        in_specs=[vmem] * (1 + len(flat)),
        out_specs=vmem,
    )(x2d, *flat)

    # epilogue (sigmoid / tanh / L2-normalize) is fused in-kernel; just split.
    return y[:B, :P_DIM], y[:B, P_DIM:]


# ---------------------------- reference (pure JAX, f32) ----------------------
def lstm_forward_reference(x, params):
    B, T, _ = x.shape
    h_seq = x
    for (w_ih, w_hh, b_ih, b_hh) in params["layers"]:
        H = w_hh.shape[1]
        h = jnp.zeros((B, H), jnp.float32)
        c = jnp.zeros((B, H), jnp.float32)
        outs = []
        for t in range(T):
            gates = h_seq[:, t] @ w_ih.T + h @ w_hh.T + b_ih + b_hh
            i = jax.nn.sigmoid(gates[:, :H])
            f = jax.nn.sigmoid(gates[:, H:2 * H])
            g = jnp.tanh(gates[:, 2 * H:3 * H])
            o = jax.nn.sigmoid(gates[:, 3 * H:])
            c = f * c + i * g
            h = o * jnp.tanh(c)
            outs.append(h)
        h_seq = jnp.stack(outs, axis=1)
    w_fc, b_fc = params["fc"]
    y = h_seq[:, -1] @ w_fc.T + b_fc
    p = jax.nn.sigmoid(y[:, :P_DIM])
    r = jnp.tanh(y[:, P_DIM:])
    r = r / jnp.maximum(jnp.linalg.norm(r, axis=1, keepdims=True), 1e-12)
    return p, r


# ---------------------------- deterministic params ---------------------------
def init_params(key, input_size, hidden_size, num_layers, output_size):
    scale = 1.0 / float(np.sqrt(hidden_size))
    layers = []
    for l in range(num_layers):
        d_in = input_size if l == 0 else hidden_size
        key, k1, k2, k3, k4 = jax.random.split(key, 5)
        w_ih = jax.random.uniform(k1, (4 * hidden_size, d_in),
                                  minval=-scale, maxval=scale, dtype=jnp.float32)
        w_hh = jax.random.uniform(k2, (4 * hidden_size, hidden_size),
                                  minval=-scale, maxval=scale, dtype=jnp.float32)
        b_ih = jax.random.uniform(k3, (4 * hidden_size,),
                                  minval=-scale, maxval=scale, dtype=jnp.float32)
        b_hh = jax.random.uniform(k4, (4 * hidden_size,),
                                  minval=-scale, maxval=scale, dtype=jnp.float32)
        layers.append((w_ih, w_hh, b_ih, b_hh))
    key, k5, k6 = jax.random.split(key, 3)
    w_fc = jax.random.uniform(k5, (output_size, hidden_size),
                              minval=-scale, maxval=scale, dtype=jnp.float32)
    b_fc = jax.random.uniform(k6, (output_size,),
                              minval=-scale, maxval=scale, dtype=jnp.float32)
    return {"layers": layers, "fc": (w_fc, b_fc)}


if __name__ == "__main__":
    input_size, hidden_size, num_layers, output_size = 16, 32, 2, 7  # 3 "p" + 4 "r"
    B, T = 2, 8

    key = jax.random.PRNGKey(0)
    pkey, xkey = jax.random.split(key)
    params = init_params(pkey, input_size, hidden_size, num_layers, output_size)
    x = jax.random.normal(xkey, (B, T, input_size), dtype=jnp.float32)

    p, r = jax.jit(lstm_forward_model)(x, params)
    jax.block_until_ready((p, r))

    p_ref, r_ref = lstm_forward_reference(x, params)
    # bf16 MXU operands (f32 accumulate / elementwise) -> slightly relaxed tol
    np.testing.assert_allclose(np.asarray(p), np.asarray(p_ref), rtol=2e-2, atol=2e-2)
    np.testing.assert_allclose(np.asarray(r), np.asarray(r_ref), rtol=2e-2, atol=2e-2)

    print("KERNEL_OK")
</pallas_src>

<mosaic_0001>
module attributes {stable_mosaic.version = 11 : i64} {
  func.func @kernel(%arg0: memref<64x16xbf16, #tpu.memory_space<vmem>>, %arg1: memref<16x128xbf16, #tpu.memory_space<vmem>>, %arg2: memref<32x128xbf16, #tpu.memory_space<vmem>>, %arg3: memref<1x128xf32, #tpu.memory_space<vmem>>, %arg4: memref<32x128xbf16, #tpu.memory_space<vmem>>, %arg5: memref<32x128xbf16, #tpu.memory_space<vmem>>, %arg6: memref<1x128xf32, #tpu.memory_space<vmem>>, %arg7: memref<32x7xbf16, #tpu.memory_space<vmem>>, %arg8: memref<1x7xf32, #tpu.memory_space<vmem>>, %arg9: memref<8x7xf32, #tpu.memory_space<vmem>>) attributes {dimension_semantics = [], scalar_prefetch = 0 : i64, scratch_operands = 0 : i64, tpu.core_type = #tpu.core_type<tc>} {
    %c0 = arith.constant 0 : index
    %c0_0 = arith.constant 0 : index
    %0 = vector.load %arg1[%c0, %c0_0] : memref<16x128xbf16, #tpu.memory_space<vmem>>, vector<16x128xbf16>
    %c0_1 = arith.constant 0 : index
    %c0_2 = arith.constant 0 : index
    %1 = vector.load %arg4[%c0_1, %c0_2] : memref<32x128xbf16, #tpu.memory_space<vmem>>, vector<32x128xbf16>
    %c0_3 = arith.constant 0 : index
    %c0_4 = arith.constant 0 : index
    %2 = vector.load %arg2[%c0_3, %c0_4] : memref<32x128xbf16, #tpu.memory_space<vmem>>, vector<32x128xbf16>
    %c0_5 = arith.constant 0 : index
    %c0_6 = arith.constant 0 : index
    %3 = vector.load %arg5[%c0_5, %c0_6] : memref<32x128xbf16, #tpu.memory_space<vmem>>, vector<32x128xbf16>
    %c0_7 = arith.constant 0 : index
    %c0_8 = arith.constant 0 : index
    %4 = vector.load %arg3[%c0_7, %c0_8] : memref<1x128xf32, #tpu.memory_space<vmem>>, vector<1x128xf32>
    %c0_9 = arith.constant 0 : index
    %c0_10 = arith.constant 0 : index
    %5 = vector.load %arg6[%c0_9, %c0_10] : memref<1x128xf32, #tpu.memory_space<vmem>>, vector<1x128xf32>
    %6 = vector.shape_cast %5 : vector<1x128xf32> to vector<1x128xf32>
    %7 = vector.broadcast %6 : vector<1x128xf32> to vector<8x128xf32>
    %c0_11 = arith.constant 0 : index
    %c0_12 = arith.constant 0 : index
    %8 = vector.load %arg0[%c0_11, %c0_12] : memref<64x16xbf16, #tpu.memory_space<vmem>>, vector<64x16xbf16>
    %cst = arith.constant dense<0.000000e+00> : vector<64x128xf32>
    %9 = tpu.matmul %8, %0, %cst {dimension_numbers = #tpu.dot_dimension_numbers<[1], [0], [0], [1], [0, 0, 1, 1], [], []>} : vector<64x16xbf16>, vector<16x128xbf16>, vector<64x128xf32> -> vector<64x128xf32>
    %10 = vector.broadcast %4 : vector<1x128xf32> to vector<64x128xf32>
    %11 = arith.addf %9, %10 : vector<64x128xf32>
    %cst_13 = arith.constant 0.000000e+00 : f32
    %12 = vector.broadcast %cst_13 : f32 to vector<8x32xf32>
    %cst_14 = arith.constant 0.000000e+00 : f32
    %13 = vector.broadcast %cst_14 : f32 to vector<8x32xf32>
    %cst_15 = arith.constant 0.000000e+00 : f32
    %14 = vector.broadcast %cst_15 : f32 to vector<8x32xf32>
    %cst_16 = arith.constant 0.000000e+00 : f32
    %15 = vector.broadcast %cst_16 : f32 to vector<8x32xf32>
    %16 = vector.extract_strided_slice %11 {offsets = [0, 0], sizes = [8, 128], strides = [1, 1]} : vector<64x128xf32> to vector<8x128xf32>
    %17 = arith.truncf %12 : vector<8x32xf32> to vector<8x32xbf16>
    %cst_17 = arith.constant dense<0.000000e+00> : vector<8x128xf32>
    %18 = tpu.matmul %17, %2, %cst_17 {dimension_numbers = #tpu.dot_dimension_numbers<[1], [0], [0], [1], [0, 0, 1, 1], [], []>} : vector<8x32xbf16>, vector<32x128xbf16>, vector<8x128xf32> -> vector<8x128xf32>
    %19 = arith.addf %16, %18 : vector<8x128xf32>
    %cst_18 = arith.constant 5.000000e-01 : f32
    %20 = vector.broadcast %cst_18 : f32 to vector<8x128xf32>
    %21 = arith.mulf %20, %19 : vector<8x128xf32>
    %22 = math.tanh %21 : vector<8x128xf32>
    %cst_19 = arith.constant 5.000000e-01 : f32
    %23 = vector.broadcast %cst_19 : f32 to vector<8x128xf32>
    %24 = arith.mulf %23, %22 : vector<8x128xf32>
    %cst_20 = arith.constant 5.000000e-01 : f32
    %25 = vector.broadcast %cst_20 : f32 to vector<8x128xf32>
    %26 = arith.addf %24, %25 : vector<8x128xf32>
    %27 = math.tanh %19 : vector<8x128xf32>
    %28 = vector.extract_strided_slice %26 {offsets = [0, 0], sizes = [8, 32], strides = [1, 1]} : vector<8x128xf32> to vector<8x32xf32>
    %c96_i32 = arith.constant 96 : i32
    %29 = tpu.dynamic_rotate %26 by %c96_i32 dim 1 : vector<8x128xf32>, i32 -> vector<8x128xf32>
    %30 = vector.extract_strided_slice %29 {offsets = [0, 0], sizes = [8, 32], strides = [1, 1]} : vector<8x128xf32> to vector<8x32xf32>
    %c64_i32 = arith.constant 64 : i32
    %31 = tpu.dynamic_rotate %27 by %c64_i32 dim 1 : vector<8x128xf32>, i32 -> vector<8x128xf32>
    %32 = vector.extract_strided_slice %31 {offsets = [0, 0], sizes = [8, 32], strides = [1, 1]} : vector<8x128xf32> to vector<8x32xf32>
    %c32_i32 = arith.constant 32 : i32
    %33 = tpu.dynamic_rotate %26 by %c32_i32 dim 1 : vector<8x128xf32>, i32 -> vector<8x128xf32>
    %34 = vector.extract_strided_slice %33 {offsets = [0, 0], sizes = [8, 32], strides = [1, 1]} : vector<8x128xf32> to vector<8x32xf32>
    %35 = arith.mulf %30, %14 : vector<8x32xf32>
    %36 = arith.mulf %28, %32 : vector<8x32xf32>
    %37 = arith.addf %35, %36 : vector<8x32xf32>
    %38 = math.tanh %37 : vector<8x32xf32>
    %39 = arith.mulf %34, %38 : vector<8x32xf32>
    %40 = arith.truncf %39 : vector<8x32xf32> to vector<8x32xbf16>
    %cst_21 = arith.constant dense<0.000000e+00> : vector<8x128xf32>
    %41 = tpu.matmul %40, %1, %cst_21 {dimension_numbers = #tpu.dot_dimension_numbers<[1], [0], [0], [1], [0, 0, 1, 1], [], []>} : vector<8x32xbf16>, vector<32x128xbf16>, vector<8x128xf32> -> vector<8x128xf32>
    %42 = arith.addf %41, %7 : vector<8x128xf32>
    %43 = arith.truncf %13 : vector<8x32xf32> to vector<8x32xbf16>
    %cst_22 = arith.constant dense<0.000000e+00> : vector<8x128xf32>
    %44 = tpu.matmul %43, %3, %cst_22 {dimension_numbers = #tpu.dot_dimension_numbers<[1], [0], [0], [1], [0, 0, 1, 1], [], []>} : vector<8x32xbf16>, vector<32x128xbf16>, vector<8x128xf32> -> vector<8x128xf32>
    %45 = arith.addf %42, %44 : vector<8x128xf32>
    %cst_23 = arith.constant 5.000000e-01 : f32
    %46 = vector.broadcast %cst_23 : f32 to vector<8x128xf32>
    %47 = arith.mulf %46, %45 : vector<8x128xf32>
    %48 = math.tanh %47 : vector<8x128xf32>
    %cst_24 = arith.constant 5.000000e-01 : f32
    %49 = vector.broadcast %cst_24 : f32 to vector<8x128xf32>
    %50 = arith.mulf %49, %48 : vector<8x128xf32>
    %cst_25 = arith.constant 5.000000e-01 : f32
    %51 = vector.broadcast %cst_25 : f32 to vector<8x128xf32>
    %52 = arith.addf %50, %51 : vector<8x128xf32>
    %53 = math.tanh %45 : vector<8x128xf32>
    %54 = vector.extract_strided_slice %52 {offsets = [0, 0], sizes = [8, 32], strides = [1, 1]} : vector<8x128xf32> to vector<8x32xf32>
    %c96_i32_26 = arith.constant 96 : i32
    %55 = tpu.dynamic_rotate %52 by %c96_i32_26 dim 1 : vector<8x128xf32>, i32 -> vector<8x128xf32>
    %56 = vector.extract_strided_slice %55 {offsets = [0, 0], sizes = [8, 32], strides = [1, 1]} : vector<8x128xf32> to vector<8x32xf32>
    %c64_i32_27 = arith.constant 64 : i32
    %57 = tpu.dynamic_rotate %53 by %c64_i32_27 dim 1 : vector<8x128xf32>, i32 -> vector<8x128xf32>
    %58 = vector.extract_strided_slice %57 {offsets = [0, 0], sizes = [8, 32], strides = [1, 1]} : vector<8x128xf32> to vector<8x32xf32>
    %c32_i32_28 = arith.constant 32 : i32
    %59 = tpu.dynamic_rotate %52 by %c32_i32_28 dim 1 : vector<8x128xf32>, i32 -> vector<8x128xf32>
    %60 = vector.extract_strided_slice %59 {offsets = [0, 0], sizes = [8, 32], strides = [1, 1]} : vector<8x128xf32> to vector<8x32xf32>
    %61 = arith.mulf %56, %15 : vector<8x32xf32>
    %62 = arith.mulf %54, %58 : vector<8x32xf32>
    %63 = arith.addf %61, %62 : vector<8x32xf32>
    %64 = math.tanh %63 : vector<8x32xf32>
    %65 = arith.mulf %60, %64 : vector<8x32xf32>
    %66 = vector.extract_strided_slice %11 {offsets = [8, 0], sizes = [8, 128], strides = [1, 1]} : vector<64x128xf32> to vector<8x128xf32>
    %67 = arith.truncf %39 : vector<8x32xf32> to vector<8x32xbf16>
    %cst_29 = arith.constant dense<0.000000e+00> : vector<8x128xf32>
    %68 = tpu.matmul %67, %2, %cst_29 {dimension_numbers = #tpu.dot_dimension_numbers<[1], [0], [0], [1], [0, 0, 1, 1], [], []>} : vector<8x32xbf16>, vector<32x128xbf16>, vector<8x128xf32> -> vector<8x128xf32>
    %69 = arith.addf %66, %68 : vector<8x128xf32>
    %cst_30 = arith.constant 5.000000e-01 : f32
    %70 = vector.broadcast %cst_30 : f32 to vector<8x128xf32>
    %71 = arith.mulf %70, %69 : vector<8x128xf32>
    %72 = math.tanh %71 : vector<8x128xf32>
    %cst_31 = arith.constant 5.000000e-01 : f32
    %73 = vector.broadcast %cst_31 : f32 to vector<8x128xf32>
    %74 = arith.mulf %73, %72 : vector<8x128xf32>
    %cst_32 = arith.constant 5.000000e-01 : f32
    %75 = vector.broadcast %cst_32 : f32 to vector<8x128xf32>
    %76 = arith.addf %74, %75 : vector<8x128xf32>
    %77 = math.tanh %69 : vector<8x128xf32>
    %78 = vector.extract_strided_slice %76 {offsets = [0, 0], sizes = [8, 32], strides = [1, 1]} : vector<8x128xf32> to vector<8x32xf32>
    %c96_i32_33 = arith.constant 96 : i32
    %79 = tpu.dynamic_rotate %76 by %c96_i32_33 dim 1 : vector<8x128xf32>, i32 -> vector<8x128xf32>
    %80 = vector.extract_strided_slice %79 {offsets = [0, 0], sizes = [8, 32], strides = [1, 1]} : vector<8x128xf32> to vector<8x32xf32>
    %c64_i32_34 = arith.constant 64 : i32
    %81 = tpu.dynamic_rotate %77 by %c64_i32_34 dim 1 : vector<8x128xf32>, i32 -> vector<8x128xf32>
    %82 = vector.extract_strided_slice %81 {offsets = [0, 0], sizes = [8, 32], strides = [1, 1]} : vector<8x128xf32> to vector<8x32xf32>
    %c32_i32_35 = arith.constant 32 : i32
    %83 = tpu.dynamic_rotate %76 by %c32_i32_35 dim 1 : vector<8x128xf32>, i32 -> vector<8x128xf32>
    %84 = vector.extract_strided_slice %83 {offsets = [0, 0], sizes = [8, 32], strides = [1, 1]} : vector<8x128xf32> to vector<8x32xf32>
    %85 = arith.mulf %80, %37 : vector<8x32xf32>
    %86 = arith.mulf %78, %82 : vector<8x32xf32>
    %87 = arith.addf %85, %86 : vector<8x32xf32>
    %88 = math.tanh %87 : vector<8x32xf32>
    %89 = arith.mulf %84, %88 : vector<8x32xf32>
    %90 = arith.truncf %89 : vector<8x32xf32> to vector<8x32xbf16>
    %cst_36 = arith.constant dense<0.000000e+00> : vector<8x128xf32>
    %91 = tpu.matmul %90, %1, %cst_36 {dimension_numbers = #tpu.dot_dimension_numbers<[1], [0], [0], [1], [0, 0, 1, 1], [], []>} : vector<8x32xbf16>, vector<32x128xbf16>, vector<8x128xf32> -> vector<8x128xf32>
    %92 = arith.addf %91, %7 : vector<8x128xf32>
    %93 = arith.truncf %65 : vector<8x32xf32> to vector<8x32xbf16>
    %cst_37 = arith.constant dense<0.000000e+00> : vector<8x128xf32>
    %94 = tpu.matmul %93, %3, %cst_37 {dimension_numbers = #tpu.dot_dimension_numbers<[1], [0], [0], [1], [0, 0, 1, 1], [], []>} : vector<8x32xbf16>, vector<32x128xbf16>, vector<8x128xf32> -> vector<8x128xf32>
    %95 = arith.addf %92, %94 : vector<8x128xf32>
    %cst_38 = arith.constant 5.000000e-01 : f32
    %96 = vector.broadcast %cst_38 : f32 to vector<8x128xf32>
    %97 = arith.mulf %96, %95 : vector<8x128xf32>
    %98 = math.tanh %97 : vector<8x128xf32>
    %cst_39 = arith.constant 5.000000e-01 : f32
    %99 = vector.broadcast %cst_39 : f32 to vector<8x128xf32>
    %100 = arith.mulf %99, %98 : vector<8x128xf32>
    %cst_40 = arith.constant 5.000000e-01 : f32
    %101 = vector.broadcast %cst_40 : f32 to vector<8x128xf32>
    %102 = arith.addf %100, %101 : vector<8x128xf32>
    %103 = math.tanh %95 : vector<8x128xf32>
    %104 = vector.extract_strided_slice %102 {offsets = [0, 0], sizes = [8, 32], strides = [1, 1]} : vector<8x128xf32> to vector<8x32xf32>
    %c96_i32_41 = arith.constant 96 : i32
    %105 = tpu.dynamic_rotate %102 by %c96_i32_41 dim 1 : vector<8x128xf32>, i32 -> vector<8x128xf32>
    %106 = vector.extract_strided_slice %105 {offsets = [0, 0], sizes = [8, 32], strides = [1, 1]} : vector<8x128xf32> to vector<8x32xf32>
    %c64_i32_42 = arith.constant 64 : i32
    %107 = tpu.dynamic_rotate %103 by %c64_i32_42 dim 1 : vector<8x128xf32>, i32 -> vector<8x128xf32>
    %108 = vector.extract_strided_slice %107 {offsets = [0, 0], sizes = [8, 32], strides = [1, 1]} : vector<8x128xf32> to vector<8x32xf32>
    %c32_i32_43 = arith.constant 32 : i32
    %109 = tpu.dynamic_rotate %102 by %c32_i32_43 dim 1 : vector<8x128xf32>, i32 -> vector<8x128xf32>
    %110 = vector.extract_strided_slice %109 {offsets = [0, 0], sizes = [8, 32], strides = [1, 1]} : vector<8x128xf32> to vector<8x32xf32>
    %111 = arith.mulf %106, %63 : vector<8x32xf32>
    %112 = arith.mulf %104, %108 : vector<8x32xf32>
    %113 = arith.addf %111, %112 : vector<8x32xf32>
    %114 = math.tanh %113 : vector<8x32xf32>
    %115 = arith.mulf %110, %114 : vector<8x32xf32>
    %116 = vector.extract_strided_slice %11 {offsets = [16, 0], sizes = [8, 128], strides = [1, 1]} : vector<64x128xf32> to vector<8x128xf32>
    %117 = arith.truncf %89 : vector<8x32xf32> to vector<8x32xbf16>
    %cst_44 = arith.constant dense<0.000000e+00> : vector<8x128xf32>
    %118 = tpu.matmul %117, %2, %cst_44 {dimension_numbers = #tpu.dot_dimension_numbers<[1], [0], [0], [1], [0, 0, 1, 1], [], []>} : vector<8x32xbf16>, vector<32x128xbf16>, vector<8x128xf32> -> vector<8x128xf32>
    %119 = arith.addf %116, %118 : vector<8x128xf32>
    %cst_45 = arith.constant 5.000000e-01 : f32
    %120 = vector.broadcast %cst_45 : f32 to vector<8x128xf32>
    %121 = arith.mulf %120, %119 : vector<8x128xf32>
    %122 = math.tanh %121 : vector<8x128xf32>
    %cst_46 = arith.constant 5.000000e-01 : f32
    %123 = vector.broadcast %cst_46 : f32 to vector<8x128xf32>
    %124 = arith.mulf %123, %122 : vector<8x128xf32>
    %cst_47 = arith.constant 5.000000e-01 : f32
    %125 = vector.broadcast %cst_47 : f32 to vector<8x128xf32>
    %126 = arith.addf %124, %125 : vector<8x128xf32>
    %127 = math.tanh %119 : vector<8x128xf32>
    %128 = vector.extract_strided_slice %126 {offsets = [0, 0], sizes = [8, 32], strides = [1, 1]} : vector<8x128xf32> to vector<8x32xf32>
    %c96_i32_48 = arith.constant 96 : i32
    %129 = tpu.dynamic_rotate %126 by %c96_i32_48 dim 1 : vector<8x128xf32>, i32 -> vector<8x128xf32>
    %130 = vector.extract_strided_slice %129 {offsets = [0, 0], sizes = [8, 32], strides = [1, 1]} : vector<8x128xf32> to vector<8x32xf32>
    %c64_i32_49 = arith.constant 64 : i32
    %131 = tpu.dynamic_rotate %127 by %c64_i32_49 dim 1 : vector<8x128xf32>, i32 -> vector<8x128xf32>
    %132 = vector.extract_strided_slice %131 {offsets = [0, 0], sizes = [8, 32], strides = [1, 1]} : vector<8x128xf32> to vector<8x32xf32>
    %c32_i32_50 = arith.constant 32 : i32
    %133 = tpu.dynamic_rotate %126 by %c32_i32_50 dim 1 : vector<8x128xf32>, i32 -> vector<8x128xf32>
    %134 = vector.extract_strided_slice %133 {offsets = [0, 0], sizes = [8, 32], strides = [1, 1]} : vector<8x128xf32> to vector<8x32xf32>
    %135 = arith.mulf %130, %87 : vector<8x32xf32>
    %136 = arith.mulf %128, %132 : vector<8x32xf32>
    %137 = arith.addf %135, %136 : vector<8x32xf32>
    %138 = math.tanh %137 : vector<8x32xf32>
    %139 = arith.mulf %134, %138 : vector<8x32xf32>
    %140 = arith.truncf %139 : vector<8x32xf32> to vector<8x32xbf16>
    %cst_51 = arith.constant dense<0.000000e+00> : vector<8x128xf32>
    %141 = tpu.matmul %140, %1, %cst_51 {dimension_numbers = #tpu.dot_dimension_numbers<[1], [0], [0], [1], [0, 0, 1, 1], [], []>} : vector<8x32xbf16>, vector<32x128xbf16>, vector<8x128xf32> -> vector<8x128xf32>
    %142 = arith.addf %141, %7 : vector<8x128xf32>
    %143 = arith.truncf %115 : vector<8x32xf32> to vector<8x32xbf16>
    %cst_52 = arith.constant dense<0.000000e+00> : vector<8x128xf32>
    %144 = tpu.matmul %143, %3, %cst_52 {dimension_numbers = #tpu.dot_dimension_numbers<[1], [0], [0], [1], [0, 0, 1, 1], [], []>} : vector<8x32xbf16>, vector<32x128xbf16>, vector<8x128xf32> -> vector<8x128xf32>
    %145 = arith.addf %142, %144 : vector<8x128xf32>
    %cst_53 = arith.constant 5.000000e-01 : f32
    %146 = vector.broadcast %cst_53 : f32 to vector<8x128xf32>
    %147 = arith.mulf %146, %145 : vector<8x128xf32>
    %148 = math.tanh %147 : vector<8x128xf32>
    %cst_54 = arith.constant 5.000000e-01 : f32
    %149 = vector.broadcast %cst_54 : f32 to vector<8x128xf32>
    %150 = arith.mulf %149, %148 : vector<8x128xf32>
    %cst_55 = arith.constant 5.000000e-01 : f32
    %151 = vector.broadcast %cst_55 : f32 to vector<8x128xf32>
    %152 = arith.addf %150, %151 : vector<8x128xf32>
    %153 = math.tanh %145 : vector<8x128xf32>
    %154 = vector.extract_strided_slice %152 {offsets = [0, 0], sizes = [8, 32], strides = [1, 1]} : vector<8x128xf32> to vector<8x32xf32>
    %c96_i32_56 = arith.constant 96 : i32
    %155 = tpu.dynamic_rotate %152 by %c96_i32_56 dim 1 : vector<8x128xf32>, i32 -> vector<8x128xf32>
    %156 = vector.extract_strided_slice %155 {offsets = [0, 0], sizes = [8, 32], strides = [1, 1]} : vector<8x128xf32> to vector<8x32xf32>
    %c64_i32_57 = arith.constant 64 : i32
    %157 = tpu.dynamic_rotate %153 by %c64_i32_57 dim 1 : vector<8x128xf32>, i32 -> vector<8x128xf32>
    %158 = vector.extract_strided_slice %157 {offsets = [0, 0], sizes = [8, 32], strides = [1, 1]} : vector<8x128xf32> to vector<8x32xf32>
    %c32_i32_58 = arith.constant 32 : i32
    %159 = tpu.dynamic_rotate %152 by %c32_i32_58 dim 1 : vector<8x128xf32>, i32 -> vector<8x128xf32>
    %160 = vector.extract_strided_slice %159 {offsets = [0, 0], sizes = [8, 32], strides = [1, 1]} : vector<8x128xf32> to vector<8x32xf32>
    %161 = arith.mulf %156, %113 : vector<8x32xf32>
    %162 = arith.mulf %154, %158 : vector<8x32xf32>
    %163 = arith.addf %161, %162 : vector<8x32xf32>
    %164 = math.tanh %163 : vector<8x32xf32>
    %165 = arith.mulf %160, %164 : vector<8x32xf32>
    %166 = vector.extract_strided_slice %11 {offsets = [24, 0], sizes = [8, 128], strides = [1, 1]} : vector<64x128xf32> to vector<8x128xf32>
    %167 = arith.truncf %139 : vector<8x32xf32> to vector<8x32xbf16>
    %cst_59 = arith.constant dense<0.000000e+00> : vector<8x128xf32>
    %168 = tpu.matmul %167, %2, %cst_59 {dimension_numbers = #tpu.dot_dimension_numbers<[1], [0], [0], [1], [0, 0, 1, 1], [], []>} : vector<8x32xbf16>, vector<32x128xbf16>, vector<8x128xf32> -> vector<8x128xf32>
    %169 = arith.addf %166, %168 : vector<8x128xf32>
    %cst_60 = arith.constant 5.000000e-01 : f32
    %170 = vector.broadcast %cst_60 : f32 to vector<8x128xf32>
    %171 = arith.mulf %170, %169 : vector<8x128xf32>
    %172 = math.tanh %171 : vector<8x128xf32>
    %cst_61 = arith.constant 5.000000e-01 : f32
    %173 = vector.broadcast %cst_61 : f32 to vector<8x128xf32>
    %174 = arith.mulf %173, %172 : vector<8x128xf32>
    %cst_62 = arith.constant 5.000000e-01 : f32
    %175 = vector.broadcast %cst_62 : f32 to vector<8x128xf32>
    %176 = arith.addf %174, %175 : vector<8x128xf32>
    %177 = math.tanh %169 : vector<8x128xf32>
    %178 = vector.extract_strided_slice %176 {offsets = [0, 0], sizes = [8, 32], strides = [1, 1]} : vector<8x128xf32> to vector<8x32xf32>
    %c96_i32_63 = arith.constant 96 : i32
    %179 = tpu.dynamic_rotate %176 by %c96_i32_63 dim 1 : vector<8x128xf32>, i32 -> vector<8x128xf32>
    %180 = vector.extract_strided_slice %179 {offsets = [0, 0], sizes = [8, 32], strides = [1, 1]} : vector<8x128xf32> to vector<8x32xf32>
    %c64_i32_64 = arith.constant 64 : i32
    %181 = tpu.dynamic_rotate %177 by %c64_i32_64 dim 1 : vector<8x128xf32>, i32 -> vector<8x128xf32>
    %182 = vector.extract_strided_slice %181 {offsets = [0, 0], sizes = [8, 32], strides = [1, 1]} : vector<8x128xf32> to vector<8x32xf32>
    %c32_i32_65 = arith.constant 32 : i32
    %183 = tpu.dynamic_rotate %176 by %c32_i32_65 dim 1 : vector<8x128xf32>, i32 -> vector<8x128xf32>
    %184 = vector.extract_strided_slice %183 {offsets = [0, 0], sizes = [8, 32], strides = [1, 1]} : vector<8x128xf32> to vector<8x32xf32>
    %185 = arith.mulf %180, %137 : vector<8x32xf32>
    %186 = arith.mulf %178, %182 : vector<8x32xf32>
    %187 = arith.addf %185, %186 : vector<8x32xf32>
    %188 = math.tanh %187 : vector<8x32xf32>
    %189 = arith.mulf %184, %188 : vector<8x32xf32>
    %190 = arith.truncf %189 : vector<8x32xf32> to vector<8x32xbf16>
    %cst_66 = arith.constant dense<0.000000e+00> : vector<8x128xf32>
    %191 = tpu.matmul %190, %1, %cst_66 {dimension_numbers = #tpu.dot_dimension_numbers<[1], [0], [0], [1], [0, 0, 1, 1], [], []>} : vector<8x32xbf16>, vector<32x128xbf16>, vector<8x128xf32> -> vector<8x128xf32>
    %192 = arith.addf %191, %7 : vector<8x128xf32>
    %193 = arith.truncf %165 : vector<8x32xf32> to vector<8x32xbf16>
    %cst_67 = arith.constant dense<0.000000e+00> : vector<8x128xf32>
    %194 = tpu.matmul %193, %3, %cst_67 {dimension_numbers = #tpu.dot_dimension_numbers<[1], [0], [0], [1], [0, 0, 1, 1], [], []>} : vector<8x32xbf16>, vector<32x128xbf16>, vector<8x128xf32> -> vector<8x128xf32>
    %195 = arith.addf %192, %194 : vector<8x128xf32>
    %cst_68 = arith.constant 5.000000e-01 : f32
    %196 = vector.broadcast %cst_68 : f32 to vector<8x128xf32>
    %197 = arith.mulf %196, %195 : vector<8x128xf32>
    %198 = math.tanh %197 : vector<8x128xf32>
    %cst_69 = arith.constant 5.000000e-01 : f32
    %199 = vector.broadcast %cst_69 : f32 to vector<8x128xf32>
    %200 = arith.mulf %199, %198 : vector<8x128xf32>
    %cst_70 = arith.constant 5.000000e-01 : f32
    %201 = vector.broadcast %cst_70 : f32 to vector<8x128xf32>
    %202 = arith.addf %200, %201 : vector<8x128xf32>
    %203 = math.tanh %195 : vector<8x128xf32>
    %204 = vector.extract_strided_slice %202 {offsets = [0, 0], sizes = [8, 32], strides = [1, 1]} : vector<8x128xf32> to vector<8x32xf32>
    %c96_i32_71 = arith.constant 96 : i32
    %205 = tpu.dynamic_rotate %202 by %c96_i32_71 dim 1 : vector<8x128xf32>, i32 -> vector<8x128xf32>
    %206 = vector.extract_strided_slice %205 {offsets = [0, 0], sizes = [8, 32], strides = [1, 1]} : vector<8x128xf32> to vector<8x32xf32>
    %c64_i32_72 = arith.constant 64 : i32
    %207 = tpu.dynamic_rotate %203 by %c64_i32_72 dim 1 : vector<8x128xf32>, i32 -> vector<8x128xf32>
    %208 = vector.extract_strided_slice %207 {offsets = [0, 0], sizes = [8, 32], strides = [1, 1]} : vector<8x128xf32> to vector<8x32xf32>
    %c32_i32_73 = arith.constant 32 : i32
    %209 = tpu.dynamic_rotate %202 by %c32_i32_73 dim 1 : vector<8x128xf32>, i32 -> vector<8x128xf32>
    %210 = vector.extract_strided_slice %209 {offsets = [0, 0], sizes = [8, 32], strides = [1, 1]} : vector<8x128xf32> to vector<8x32xf32>
    %211 = arith.mulf %206, %163 : vector<8x32xf32>
    %212 = arith.mulf %204, %208 : vector<8x32xf32>
    %213 = arith.addf %211, %212 : vector<8x32xf32>
    %214 = math.tanh %213 : vector<8x32xf32>
    %215 = arith.mulf %210, %214 : vector<8x32xf32>
    %216 = vector.extract_strided_slice %11 {offsets = [32, 0], sizes = [8, 128], strides = [1, 1]} : vector<64x128xf32> to vector<8x128xf32>
    %217 = arith.truncf %189 : vector<8x32xf32> to vector<8x32xbf16>
    %cst_74 = arith.constant dense<0.000000e+00> : vector<8x128xf32>
    %218 = tpu.matmul %217, %2, %cst_74 {dimension_numbers = #tpu.dot_dimension_numbers<[1], [0], [0], [1], [0, 0, 1, 1], [], []>} : vector<8x32xbf16>, vector<32x128xbf16>, vector<8x128xf32> -> vector<8x128xf32>
    %219 = arith.addf %216, %218 : vector<8x128xf32>
    %cst_75 = arith.constant 5.000000e-01 : f32
    %220 = vector.broadcast %cst_75 : f32 to vector<8x128xf32>
    %221 = arith.mulf %220, %219 : vector<8x128xf32>
    %222 = math.tanh %221 : vector<8x128xf32>
    %cst_76 = arith.constant 5.000000e-01 : f32
    %223 = vector.broadcast %cst_76 : f32 to vector<8x128xf32>
    %224 = arith.mulf %223, %222 : vector<8x128xf32>
    %cst_77 = arith.constant 5.000000e-01 : f32
    %225 = vector.broadcast %cst_77 : f32 to vector<8x128xf32>
    %226 = arith.addf %224, %225 : vector<8x128xf32>
    %227 = math.tanh %219 : vector<8x128xf32>
    %228 = vector.extract_strided_slice %226 {offsets = [0, 0], sizes = [8, 32], strides = [1, 1]} : vector<8x128xf32> to vector<8x32xf32>
    %c96_i32_78 = arith.constant 96 : i32
    %229 = tpu.dynamic_rotate %226 by %c96_i32_78 dim 1 : vector<8x128xf32>, i32 -> vector<8x128xf32>
    %230 = vector.extract_strided_slice %229 {offsets = [0, 0], sizes = [8, 32], strides = [1, 1]} : vector<8x128xf32> to vector<8x32xf32>
    %c64_i32_79 = arith.constant 64 : i32
    %231 = tpu.dynamic_rotate %227 by %c64_i32_79 dim 1 : vector<8x128xf32>, i32 -> vector<8x128xf32>
    %232 = vector.extract_strided_slice %231 {offsets = [0, 0], sizes = [8, 32], strides = [1, 1]} : vector<8x128xf32> to vector<8x32xf32>
    %c32_i32_80 = arith.constant 32 : i32
    %233 = tpu.dynamic_rotate %226 by %c32_i32_80 dim 1 : vector<8x128xf32>, i32 -> vector<8x128xf32>
    %234 = vector.extract_strided_slice %233 {offsets = [0, 0], sizes = [8, 32], strides = [1, 1]} : vector<8x128xf32> to vector<8x32xf32>
    %235 = arith.mulf %230, %187 : vector<8x32xf32>
    %236 = arith.mulf %228, %232 : vector<8x32xf32>
    %237 = arith.addf %235, %236 : vector<8x32xf32>
    %238 = math.tanh %237 : vector<8x32xf32>
    %239 = arith.mulf %234, %238 : vector<8x32xf32>
    %240 = arith.truncf %239 : vector<8x32xf32> to vector<8x32xbf16>
    %cst_81 = arith.constant dense<0.000000e+00> : vector<8x128xf32>
    %241 = tpu.matmul %240, %1, %cst_81 {dimension_numbers = #tpu.dot_dimension_numbers<[1], [0], [0], [1], [0, 0, 1, 1], [], []>} : vector<8x32xbf16>, vector<32x128xbf16>, vector<8x128xf32> -> vector<8x128xf32>
    %242 = arith.addf %241, %7 : vector<8x128xf32>
    %243 = arith.truncf %215 : vector<8x32xf32> to vector<8x32xbf16>
    %cst_82 = arith.constant dense<0.000000e+00> : vector<8x128xf32>
    %244 = tpu.matmul %243, %3, %cst_82 {dimension_numbers = #tpu.dot_dimension_numbers<[1], [0], [0], [1], [0, 0, 1, 1], [], []>} : vector<8x32xbf16>, vector<32x128xbf16>, vector<8x128xf32> -> vector<8x128xf32>
    %245 = arith.addf %242, %244 : vector<8x128xf32>
    %cst_83 = arith.constant 5.000000e-01 : f32
    %246 = vector.broadcast %cst_83 : f32 to vector<8x128xf32>
    %247 = arith.mulf %246, %245 : vector<8x128xf32>
    %248 = math.tanh %247 : vector<8x128xf32>
    %cst_84 = arith.constant 5.000000e-01 : f32
    %249 = vector.broadcast %cst_84 : f32 to vector<8x128xf32>
    %250 = arith.mulf %249, %248 : vector<8x128xf32>
    %cst_85 = arith.constant 5.000000e-01 : f32
    %251 = vector.broadcast %cst_85 : f32 to vector<8x128xf32>
    %252 = arith.addf %250, %251 : vector<8x128xf32>
    %253 = math.tanh %245 : vector<8x128xf32>
    %254 = vector.extract_strided_slice %252 {offsets = [0, 0], sizes = [8, 32], strides = [1, 1]} : vector<8x128xf32> to vector<8x32xf32>
    %c96_i32_86 = arith.constant 96 : i32
    %255 = tpu.dynamic_rotate %252 by %c96_i32_86 dim 1 : vector<8x128xf32>, i32 -> vector<8x128xf32>
    %256 = vector.extract_strided_slice %255 {offsets = [0, 0], sizes = [8, 32], strides = [1, 1]} : vector<8x128xf32> to vector<8x32xf32>
    %c64_i32_87 = arith.constant 64 : i32
    %257 = tpu.dynamic_rotate %253 by %c64_i32_87 dim 1 : vector<8x128xf32>, i32 -> vector<8x128xf32>
    %258 = vector.extract_strided_slice %257 {offsets = [0, 0], sizes = [8, 32], strides = [1, 1]} : vector<8x128xf32> to vector<8x32xf32>
    %c32_i32_88 = arith.constant 32 : i32
    %259 = tpu.dynamic_rotate %252 by %c32_i32_88 dim 1 : vector<8x128xf32>, i32 -> vector<8x128xf32>
    %260 = vector.extract_strided_slice %259 {offsets = [0, 0], sizes = [8, 32], strides = [1, 1]} : vector<8x128xf32> to vector<8x32xf32>
    %261 = arith.mulf %256, %213 : vector<8x32xf32>
    %262 = arith.mulf %254, %258 : vector<8x32xf32>
    %263 = arith.addf %261, %262 : vector<8x32xf32>
    %264 = math.tanh %263 : vector<8x32xf32>
    %265 = arith.mulf %260, %264 : vector<8x32xf32>
    %266 = vector.extract_strided_slice %11 {offsets = [40, 0], sizes = [8, 128], strides = [1, 1]} : vector<64x128xf32> to vector<8x128xf32>
    %267 = arith.truncf %239 : vector<8x32xf32> to vector<8x32xbf16>
    %cst_89 = arith.constant dense<0.000000e+00> : vector<8x128xf32>
    %268 = tpu.matmul %267, %2, %cst_89 {dimension_numbers = #tpu.dot_dimension_numbers<[1], [0], [0], [1], [0, 0, 1, 1], [], []>} : vector<8x32xbf16>, vector<32x128xbf16>, vector<8x128xf32> -> vector<8x128xf32>
    %269 = arith.addf %266, %268 : vector<8x128xf32>
    %cst_90 = arith.constant 5.000000e-01 : f32
    %270 = vector.broadcast %cst_90 : f32 to vector<8x128xf32>
    %271 = arith.mulf %270, %269 : vector<8x128xf32>
    %272 = math.tanh %271 : vector<8x128xf32>
    %cst_91 = arith.constant 5.000000e-01 : f32
    %273 = vector.broadcast %cst_91 : f32 to vector<8x128xf32>
    %274 = arith.mulf %273, %272 : vector<8x128xf32>
    %cst_92 = arith.constant 5.000000e-01 : f32
    %275 = vector.broadcast %cst_92 : f32 to vector<8x128xf32>
    %276 = arith.addf %274, %275 : vector<8x128xf32>
    %277 = math.tanh %269 : vector<8x128xf32>
    %278 = vector.extract_strided_slice %276 {offsets = [0, 0], sizes = [8, 32], strides = [1, 1]} : vector<8x128xf32> to vector<8x32xf32>
    %c96_i32_93 = arith.constant 96 : i32
    %279 = tpu.dynamic_rotate %276 by %c96_i32_93 dim 1 : vector<8x128xf32>, i32 -> vector<8x128xf32>
    %280 = vector.extract_strided_slice %279 {offsets = [0, 0], sizes = [8, 32], strides = [1, 1]} : vector<8x128xf32> to vector<8x32xf32>
    %c64_i32_94 = arith.constant 64 : i32
    %281 = tpu.dynamic_rotate %277 by %c64_i32_94 dim 1 : vector<8x128xf32>, i32 -> vector<8x128xf32>
    %282 = vector.extract_strided_slice %281 {offsets = [0, 0], sizes = [8, 32], strides = [1, 1]} : vector<8x128xf32> to vector<8x32xf32>
    %c32_i32_95 = arith.constant 32 : i32
    %283 = tpu.dynamic_rotate %276 by %c32_i32_95 dim 1 : vector<8x128xf32>, i32 -> vector<8x128xf32>
    %284 = vector.extract_strided_slice %283 {offsets = [0, 0], sizes = [8, 32], strides = [1, 1]} : vector<8x128xf32> to vector<8x32xf32>
    %285 = arith.mulf %280, %237 : vector<8x32xf32>
    %286 = arith.mulf %278, %282 : vector<8x32xf32>
    %287 = arith.addf %285, %286 : vector<8x32xf32>
    %288 = math.tanh %287 : vector<8x32xf32>
    %289 = arith.mulf %284, %288 : vector<8x32xf32>
    %290 = arith.truncf %289 : vector<8x32xf32> to vector<8x32xbf16>
    %cst_96 = arith.constant dense<0.000000e+00> : vector<8x128xf32>
    %291 = tpu.matmul %290, %1, %cst_96 {dimension_numbers = #tpu.dot_dimension_numbers<[1], [0], [0], [1], [0, 0, 1, 1], [], []>} : vector<8x32xbf16>, vector<32x128xbf16>, vector<8x128xf32> -> vector<8x128xf32>
    %292 = arith.addf %291, %7 : vector<8x128xf32>
    %293 = arith.truncf %265 : vector<8x32xf32> to vector<8x32xbf16>
    %cst_97 = arith.constant dense<0.000000e+00> : vector<8x128xf32>
    %294 = tpu.matmul %293, %3, %cst_97 {dimension_numbers = #tpu.dot_dimension_numbers<[1], [0], [0], [1], [0, 0, 1, 1], [], []>} : vector<8x32xbf16>, vector<32x128xbf16>, vector<8x128xf32> -> vector<8x128xf32>
    %295 = arith.addf %292, %294 : vector<8x128xf32>
    %cst_98 = arith.constant 5.000000e-01 : f32
    %296 = vector.broadcast %cst_98 : f32 to vector<8x128xf32>
    %297 = arith.mulf %296, %295 : vector<8x128xf32>
    %298 = math.tanh %297 : vector<8x128xf32>
    %cst_99 = arith.constant 5.000000e-01 : f32
    %299 = vector.broadcast %cst_99 : f32 to vector<8x128xf32>
    %300 = arith.mulf %299, %298 : vector<8x128xf32>
    %cst_100 = arith.constant 5.000000e-01 : f32
    %301 = vector.broadcast %cst_100 : f32 to vector<8x128xf32>
    %302 = arith.addf %300, %301 : vector<8x128xf32>
    %303 = math.tanh %295 : vector<8x128xf32>
    %304 = vector.extract_strided_slice %302 {offsets = [0, 0], sizes = [8, 32], strides = [1, 1]} : vector<8x128xf32> to vector<8x32xf32>
    %c96_i32_101 = arith.constant 96 : i32
    %305 = tpu.dynamic_rotate %302 by %c96_i32_101 dim 1 : vector<8x128xf32>, i32 -> vector<8x128xf32>
    %306 = vector.extract_strided_slice %305 {offsets = [0, 0], sizes = [8, 32], strides = [1, 1]} : vector<8x128xf32> to vector<8x32xf32>
    %c64_i32_102 = arith.constant 64 : i32
    %307 = tpu.dynamic_rotate %303 by %c64_i32_102 dim 1 : vector<8x128xf32>, i32 -> vector<8x128xf32>
    %308 = vector.extract_strided_slice %307 {offsets = [0, 0], sizes = [8, 32], strides = [1, 1]} : vector<8x128xf32> to vector<8x32xf32>
    %c32_i32_103 = arith.constant 32 : i32
    %309 = tpu.dynamic_rotate %302 by %c32_i32_103 dim 1 : vector<8x128xf32>, i32 -> vector<8x128xf32>
    %310 = vector.extract_strided_slice %309 {offsets = [0, 0], sizes = [8, 32], strides = [1, 1]} : vector<8x128xf32> to vector<8x32xf32>
    %311 = arith.mulf %306, %263 : vector<8x32xf32>
    %312 = arith.mulf %304, %308 : vector<8x32xf32>
    %313 = arith.addf %311, %312 : vector<8x32xf32>
    %314 = math.tanh %313 : vector<8x32xf32>
    %315 = arith.mulf %310, %314 : vector<8x32xf32>
    %316 = vector.extract_strided_slice %11 {offsets = [48, 0], sizes = [8, 128], strides = [1, 1]} : vector<64x128xf32> to vector<8x128xf32>
    %317 = arith.truncf %289 : vector<8x32xf32> to vector<8x32xbf16>
    %cst_104 = arith.constant dense<0.000000e+00> : vector<8x128xf32>
    %318 = tpu.matmul %317, %2, %cst_104 {dimension_numbers = #tpu.dot_dimension_numbers<[1], [0], [0], [1], [0, 0, 1, 1], [], []>} : vector<8x32xbf16>, vector<32x128xbf16>, vector<8x128xf32> -> vector<8x128xf32>
    %319 = arith.addf %316, %318 : vector<8x128xf32>
    %cst_105 = arith.constant 5.000000e-01 : f32
    %320 = vector.broadcast %cst_105 : f32 to vector<8x128xf32>
    %321 = arith.mulf %320, %319 : vector<8x128xf32>
    %322 = math.tanh %321 : vector<8x128xf32>
    %cst_106 = arith.constant 5.000000e-01 : f32
    %323 = vector.broadcast %cst_106 : f32 to vector<8x128xf32>
    %324 = arith.mulf %323, %322 : vector<8x128xf32>
    %cst_107 = arith.constant 5.000000e-01 : f32
    %325 = vector.broadcast %cst_107 : f32 to vector<8x128xf32>
    %326 = arith.addf %324, %325 : vector<8x128xf32>
    %327 = math.tanh %319 : vector<8x128xf32>
    %328 = vector.extract_strided_slice %326 {offsets = [0, 0], sizes = [8, 32], strides = [1, 1]} : vector<8x128xf32> to vector<8x32xf32>
    %c96_i32_108 = arith.constant 96 : i32
    %329 = tpu.dynamic_rotate %326 by %c96_i32_108 dim 1 : vector<8x128xf32>, i32 -> vector<8x128xf32>
    %330 = vector.extract_strided_slice %329 {offsets = [0, 0], sizes = [8, 32], strides = [1, 1]} : vector<8x128xf32> to vector<8x32xf32>
    %c64_i32_109 = arith.constant 64 : i32
    %331 = tpu.dynamic_rotate %327 by %c64_i32_109 dim 1 : vector<8x128xf32>, i32 -> vector<8x128xf32>
    %332 = vector.extract_strided_slice %331 {offsets = [0, 0], sizes = [8, 32], strides = [1, 1]} : vector<8x128xf32> to vector<8x32xf32>
    %c32_i32_110 = arith.constant 32 : i32
    %333 = tpu.dynamic_rotate %326 by %c32_i32_110 dim 1 : vector<8x128xf32>, i32 -> vector<8x128xf32>
    %334 = vector.extract_strided_slice %333 {offsets = [0, 0], sizes = [8, 32], strides = [1, 1]} : vector<8x128xf32> to vector<8x32xf32>
    %335 = arith.mulf %330, %287 : vector<8x32xf32>
    %336 = arith.mulf %328, %332 : vector<8x32xf32>
    %337 = arith.addf %335, %336 : vector<8x32xf32>
    %338 = math.tanh %337 : vector<8x32xf32>
    %339 = arith.mulf %334, %338 : vector<8x32xf32>
    %340 = arith.truncf %339 : vector<8x32xf32> to vector<8x32xbf16>
    %cst_111 = arith.constant dense<0.000000e+00> : vector<8x128xf32>
    %341 = tpu.matmul %340, %1, %cst_111 {dimension_numbers = #tpu.dot_dimension_numbers<[1], [0], [0], [1], [0, 0, 1, 1], [], []>} : vector<8x32xbf16>, vector<32x128xbf16>, vector<8x128xf32> -> vector<8x128xf32>
    %342 = arith.addf %341, %7 : vector<8x128xf32>
    %343 = arith.truncf %315 : vector<8x32xf32> to vector<8x32xbf16>
    %cst_112 = arith.constant dense<0.000000e+00> : vector<8x128xf32>
    %344 = tpu.matmul %343, %3, %cst_112 {dimension_numbers = #tpu.dot_dimension_numbers<[1], [0], [0], [1], [0, 0, 1, 1], [], []>} : vector<8x32xbf16>, vector<32x128xbf16>, vector<8x128xf32> -> vector<8x128xf32>
    %345 = arith.addf %342, %344 : vector<8x128xf32>
    %cst_113 = arith.constant 5.000000e-01 : f32
    %346 = vector.broadcast %cst_113 : f32 to vector<8x128xf32>
    %347 = arith.mulf %346, %345 : vector<8x128xf32>
    %348 = math.tanh %347 : vector<8x128xf32>
    %cst_114 = arith.constant 5.000000e-01 : f32
    %349 = vector.broadcast %cst_114 : f32 to vector<8x128xf32>
    %350 = arith.mulf %349, %348 : vector<8x128xf32>
    %cst_115 = arith.constant 5.000000e-01 : f32
    %351 = vector.broadcast %cst_115 : f32 to vector<8x128xf32>
    %352 = arith.addf %350, %351 : vector<8x128xf32>
    %353 = math.tanh %345 : vector<8x128xf32>
    %354 = vector.extract_strided_slice %352 {offsets = [0, 0], sizes = [8, 32], strides = [1, 1]} : vector<8x128xf32> to vector<8x32xf32>
    %c96_i32_116 = arith.constant 96 : i32
    %355 = tpu.dynamic_rotate %352 by %c96_i32_116 dim 1 : vector<8x128xf32>, i32 -> vector<8x128xf32>
    %356 = vector.extract_strided_slice %355 {offsets = [0, 0], sizes = [8, 32], strides = [1, 1]} : vector<8x128xf32> to vector<8x32xf32>
    %c64_i32_117 = arith.constant 64 : i32
    %357 = tpu.dynamic_rotate %353 by %c64_i32_117 dim 1 : vector<8x128xf32>, i32 -> vector<8x128xf32>
    %358 = vector.extract_strided_slice %357 {offsets = [0, 0], sizes = [8, 32], strides = [1, 1]} : vector<8x128xf32> to vector<8x32xf32>
    %c32_i32_118 = arith.constant 32 : i32
    %359 = tpu.dynamic_rotate %352 by %c32_i32_118 dim 1 : vector<8x128xf32>, i32 -> vector<8x128xf32>
    %360 = vector.extract_strided_slice %359 {offsets = [0, 0], sizes = [8, 32], strides = [1, 1]} : vector<8x128xf32> to vector<8x32xf32>
    %361 = arith.mulf %356, %313 : vector<8x32xf32>
    %362 = arith.mulf %354, %358 : vector<8x32xf32>
    %363 = arith.addf %361, %362 : vector<8x32xf32>
    %364 = math.tanh %363 : vector<8x32xf32>
    %365 = arith.mulf %360, %364 : vector<8x32xf32>
    %366 = vector.extract_strided_slice %11 {offsets = [56, 0], sizes = [8, 128], strides = [1, 1]} : vector<64x128xf32> to vector<8x128xf32>
    %367 = arith.truncf %339 : vector<8x32xf32> to vector<8x32xbf16>
    %cst_119 = arith.constant dense<0.000000e+00> : vector<8x128xf32>
    %368 = tpu.matmul %367, %2, %cst_119 {dimension_numbers = #tpu.dot_dimension_numbers<[1], [0], [0], [1], [0, 0, 1, 1], [], []>} : vector<8x32xbf16>, vector<32x128xbf16>, vector<8x128xf32> -> vector<8x128xf32>
    %369 = arith.addf %366, %368 : vector<8x128xf32>
    %cst_120 = arith.constant 5.000000e-01 : f32
    %370 = vector.broadcast %cst_120 : f32 to vector<8x128xf32>
    %371 = arith.mulf %370, %369 : vector<8x128xf32>
    %372 = math.tanh %371 : vector<8x128xf32>
    %cst_121 = arith.constant 5.000000e-01 : f32
    %373 = vector.broadcast %cst_121 : f32 to vector<8x128xf32>
    %374 = arith.mulf %373, %372 : vector<8x128xf32>
    %cst_122 = arith.constant 5.000000e-01 : f32
    %375 = vector.broadcast %cst_122 : f32 to vector<8x128xf32>
    %376 = arith.addf %374, %375 : vector<8x128xf32>
    %377 = math.tanh %369 : vector<8x128xf32>
    %378 = vector.extract_strided_slice %376 {offsets = [0, 0], sizes = [8, 32], strides = [1, 1]} : vector<8x128xf32> to vector<8x32xf32>
    %c96_i32_123 = arith.constant 96 : i32
    %379 = tpu.dynamic_rotate %376 by %c96_i32_123 dim 1 : vector<8x128xf32>, i32 -> vector<8x128xf32>
    %380 = vector.extract_strided_slice %379 {offsets = [0, 0], sizes = [8, 32], strides = [1, 1]} : vector<8x128xf32> to vector<8x32xf32>
    %c64_i32_124 = arith.constant 64 : i32
    %381 = tpu.dynamic_rotate %377 by %c64_i32_124 dim 1 : vector<8x128xf32>, i32 -> vector<8x128xf32>
    %382 = vector.extract_strided_slice %381 {offsets = [0, 0], sizes = [8, 32], strides = [1, 1]} : vector<8x128xf32> to vector<8x32xf32>
    %c32_i32_125 = arith.constant 32 : i32
    %383 = tpu.dynamic_rotate %376 by %c32_i32_125 dim 1 : vector<8x128xf32>, i32 -> vector<8x128xf32>
    %384 = vector.extract_strided_slice %383 {offsets = [0, 0], sizes = [8, 32], strides = [1, 1]} : vector<8x128xf32> to vector<8x32xf32>
    %385 = arith.mulf %380, %337 : vector<8x32xf32>
    %386 = arith.mulf %378, %382 : vector<8x32xf32>
    %387 = arith.addf %385, %386 : vector<8x32xf32>
    %388 = math.tanh %387 : vector<8x32xf32>
    %389 = arith.mulf %384, %388 : vector<8x32xf32>
    %390 = arith.truncf %389 : vector<8x32xf32> to vector<8x32xbf16>
    %cst_126 = arith.constant dense<0.000000e+00> : vector<8x128xf32>
    %391 = tpu.matmul %390, %1, %cst_126 {dimension_numbers = #tpu.dot_dimension_numbers<[1], [0], [0], [1], [0, 0, 1, 1], [], []>} : vector<8x32xbf16>, vector<32x128xbf16>, vector<8x128xf32> -> vector<8x128xf32>
    %392 = arith.addf %391, %7 : vector<8x128xf32>
    %393 = arith.truncf %365 : vector<8x32xf32> to vector<8x32xbf16>
    %cst_127 = arith.constant dense<0.000000e+00> : vector<8x128xf32>
    %394 = tpu.matmul %393, %3, %cst_127 {dimension_numbers = #tpu.dot_dimension_numbers<[1], [0], [0], [1], [0, 0, 1, 1], [], []>} : vector<8x32xbf16>, vector<32x128xbf16>, vector<8x128xf32> -> vector<8x128xf32>
    %395 = arith.addf %392, %394 : vector<8x128xf32>
    %cst_128 = arith.constant 5.000000e-01 : f32
    %396 = vector.broadcast %cst_128 : f32 to vector<8x128xf32>
    %397 = arith.mulf %396, %395 : vector<8x128xf32>
    %398 = math.tanh %397 : vector<8x128xf32>
    %cst_129 = arith.constant 5.000000e-01 : f32
    %399 = vector.broadcast %cst_129 : f32 to vector<8x128xf32>
    %400 = arith.mulf %399, %398 : vector<8x128xf32>
    %cst_130 = arith.constant 5.000000e-01 : f32
    %401 = vector.broadcast %cst_130 : f32 to vector<8x128xf32>
    %402 = arith.addf %400, %401 : vector<8x128xf32>
    %403 = math.tanh %395 : vector<8x128xf32>
    %404 = vector.extract_strided_slice %402 {offsets = [0, 0], sizes = [8, 32], strides = [1, 1]} : vector<8x128xf32> to vector<8x32xf32>
    %c96_i32_131 = arith.constant 96 : i32
    %405 = tpu.dynamic_rotate %402 by %c96_i32_131 dim 1 : vector<8x128xf32>, i32 -> vector<8x128xf32>
    %406 = vector.extract_strided_slice %405 {offsets = [0, 0], sizes = [8, 32], strides = [1, 1]} : vector<8x128xf32> to vector<8x32xf32>
    %c64_i32_132 = arith.constant 64 : i32
    %407 = tpu.dynamic_rotate %403 by %c64_i32_132 dim 1 : vector<8x128xf32>, i32 -> vector<8x128xf32>
    %408 = vector.extract_strided_slice %407 {offsets = [0, 0], sizes = [8, 32], strides = [1, 1]} : vector<8x128xf32> to vector<8x32xf32>
    %c32_i32_133 = arith.constant 32 : i32
    %409 = tpu.dynamic_rotate %402 by %c32_i32_133 dim 1 : vector<8x128xf32>, i32 -> vector<8x128xf32>
    %410 = vector.extract_strided_slice %409 {offsets = [0, 0], sizes = [8, 32], strides = [1, 1]} : vector<8x128xf32> to vector<8x32xf32>
    %411 = arith.mulf %406, %363 : vector<8x32xf32>
    %412 = arith.mulf %404, %408 : vector<8x32xf32>
    %413 = arith.addf %411, %412 : vector<8x32xf32>
    %414 = math.tanh %413 : vector<8x32xf32>
    %415 = arith.mulf %410, %414 : vector<8x32xf32>
    %416 = arith.truncf %415 : vector<8x32xf32> to vector<8x32xbf16>
    %c0_134 = arith.constant 0 : index
    %c0_135 = arith.constant 0 : index
    %417 = vector.load %arg7[%c0_134, %c0_135] : memref<32x7xbf16, #tpu.memory_space<vmem>>, vector<32x7xbf16>
    %cst_136 = arith.constant dense<0.000000e+00> : vector<8x7xf32>
    %418 = tpu.matmul %416, %417, %cst_136 {dimension_numbers = #tpu.dot_dimension_numbers<[1], [0], [0], [1], [0, 0, 1, 1], [], []>} : vector<8x32xbf16>, vector<32x7xbf16>, vector<8x7xf32> -> vector<8x7xf32>
    %c0_137 = arith.constant 0 : index
    %c0_138 = arith.constant 0 : index
    %419 = vector.load %arg8[%c0_137, %c0_138] : memref<1x7xf32, #tpu.memory_space<vmem>>, vector<1x7xf32>
    %420 = vector.broadcast %419 : vector<1x7xf32> to vector<8x7xf32>
    %421 = arith.addf %418, %420 : vector<8x7xf32>
    %422 = tpu.iota {dimensions = array<i32: 1>} : vector<8x7xi32>
    %c3_i32 = arith.constant 3 : i32
    %423 = vector.broadcast %c3_i32 : i32 to vector<8x7xi32>
    %424 = arith.cmpi slt, %422, %423 : vector<8x7xi32>
    %cst_139 = arith.constant 5.000000e-01 : f32
    %425 = vector.broadcast %cst_139 : f32 to vector<8x7xf32>
    %426 = arith.mulf %425, %421 : vector<8x7xf32>
    %427 = math.tanh %426 : vector<8x7xf32>
    %cst_140 = arith.constant 5.000000e-01 : f32
    %428 = vector.broadcast %cst_140 : f32 to vector<8x7xf32>
    %429 = arith.mulf %428, %427 : vector<8x7xf32>
    %cst_141 = arith.constant 5.000000e-01 : f32
    %430 = vector.broadcast %cst_141 : f32 to vector<8x7xf32>
    %431 = arith.addf %429, %430 : vector<8x7xf32>
    %432 = math.tanh %421 : vector<8x7xf32>
    %cst_142 = arith.constant 0.000000e+00 : f32
    %433 = vector.broadcast %cst_142 : f32 to vector<8x7xf32>
    %434 = arith.select %424, %433, %432 : vector<8x7xi1>, vector<8x7xf32>
    %435 = arith.mulf %434, %434 : vector<8x7xf32>
    %cst_143 = arith.constant dense<0.000000e+00> : vector<8xf32>
    %436 = vector.multi_reduction <add>, %435, %cst_143 [1] : vector<8x7xf32> to vector<8xf32>
    %437 = vector.shape_cast %436 : vector<8xf32> to vector<8x1xf32>
    %cst_144 = arith.constant 1.000000e-24 : f32
    %438 = vector.broadcast %cst_144 : f32 to vector<8x1xf32>
    %439 = arith.maximumf %437, %438 : vector<8x1xf32>
    %440 = math.rsqrt %439 : vector<8x1xf32>
    %441 = vector.broadcast %440 : vector<8x1xf32> to vector<8x7xf32>
    %442 = arith.mulf %432, %441 : vector<8x7xf32>
    %443 = arith.select %424, %431, %442 : vector<8x7xi1>, vector<8x7xf32>
    %c0_145 = arith.constant 0 : index
    %c0_146 = arith.constant 0 : index
    %444 = vector.load %arg9[%c0_145, %c0_146] : memref<8x7xf32, #tpu.memory_space<vmem>>, vector<8x7xf32>
    tpu.vector_store %arg9[%c0_145, %c0_146], %443 {strides = array<i32>} : memref<8x7xf32, #tpu.memory_space<vmem>>, vector<8x7xf32>,
    return
  }
}

</mosaic_0001>

<bundles_post_ra>
// kernel: lstm_forward_model.1
= control target key start
LH: loop header
LB: loop body
LE: loop exit
PB: predicated region body
PF: predicated region fallthrough
CT: control target
= control target key end

     0   :  { %v2052_v0 = vmov 0.0   ;;  %vm2053_vm0 = vmmov 0   ;;  %vm95_vm1 = vcmask 130048   ;;  %v2054_v6 = vmov 0   ;;  %s2055_s10 = smov 32   ;;  %s2056_s11 = smov 96   ;;  %s2494_s1 = inlined_call_operand.vmem [shape: bf16[16,128], index: 1, kind: input, shape index: {}]   ;;  %s2495_s2 = inlined_call_operand.vmem [shape: bf16[32,128], index: 2, kind: input, shape index: {}]   ;;  %s2496_s0 = inlined_call_operand.vmem [shape: bf16[64,16], index: 0, kind: input, shape index: {}]   ;;  %s2497_s3 = inlined_call_operand.vmem [shape: f32[1,128], index: 3, kind: input, shape index: {}]   ;;  %s2498_s4 = inlined_call_operand.vmem [shape: bf16[32,128], index: 4, kind: input, shape index: {}]   ;;  %s2499_s5 = inlined_call_operand.vmem [shape: bf16[32,128], index: 5, kind: input, shape index: {}]   ;;  %s2500_s6 = inlined_call_operand.vmem [shape: f32[1,128], index: 6, kind: input, shape index: {}]   ;;  %s2501_s7 = inlined_call_operand.vmem [shape: bf16[32,7], index: 7, kind: input, shape index: {}]   ;;  %s2502_s8 = inlined_call_operand.vmem [shape: f32[1,7], index: 8, kind: input, shape index: {}]   ;;  %s2503_s9 = inlined_call_operand.vmem [shape: f32[8,7], index: 9, kind: output, shape index: {}]  }
   0x1   :  { %1728 = vmatprep.subr.bf16.mxu1 %v2052_v0  ;;  %v1934_v1 = vld [vmem:[%s2494_s1] sm:$0xff]   ;;  %1732 = vmatprep.mubr.msk.bf16.mxu1 %vm2053_vm0, %v2052_v0  ;;  %v2117_v2 = vld [vmem:[%s2495_s2 + $0x8] sm:$0xff]   ;;  %v1940_v18 = vld [vmem:[%s2496_s0 + $0x10] sm:$0xff]   ;;  %vm185_vm2 = vcmask 261120   ;;  %vm1582_vm4 = vcmask 56320  }
   0x2   :  { %1718 = vmatprep.subr.bf16.mxu0 %v1934_v1  ;;  %v1936_v3 = vld [vmem:[%s2496_s0] sm:$0xff]   ;;  %1729 = vmatpush3.bf16.msra.mxu1 %v2117_v2  ;;  %v1937_v4 = vld [vmem:[%s2496_s0 + $0x8] sm:$0xff]   ;;  %v1941_v19 = vld [vmem:[%s2496_s0 + $0x18] sm:$0xff]  }
   0x3   :  { %1719 = vmatpush3.bf16.msra.mxu0 %v1934_v1  ;;  %1720 = vmatprep.mubr.msk.bf16.mxu0 %vm95_vm1, %v1936_v3  ;;  %v2131_v5 = vld [vmem:[%s2495_s2] sm:$0xff]   ;;  %v2156_v21 = vld [vmem:[%s2498_s4 + $0x8] sm:$0xff]  }
   0x4   :  { %1730 = vmatprep.subr.bf16.mxu1 %v2052_v0  ;;  %1744 = vmatprep.subr.bf16.mxu0 %v2052_v0  ;;  %v2144_v8 = vld [vmem:[%s2497_s3] ss:$0 sm:$0xff]  ;;  %v2162_v22 = vld [vmem:[%s2499_s5 + $0x8] sm:$0xff]  }
   0x5   :  { %v2169_v24 = vld [vmem:[%s2498_s4] sm:$0xff]   ;;  %s2057_s4 = smov 64  }
   0x6   :  { %1721 = vmatmul.mubr.msk.bf16.vlgmr.msra.gmra.mxu0 %vm95_vm1, %v1937_v4  ;;  %1731 = vmatpush3.bf16.msra.mxu1 %v2131_v5  ;;  %v2176_v25 = vld [vmem:[%s2499_s5] sm:$0xff]  }
   0x7   :  { %1736 = vmatprep.subr.bf16.mxu1 %v2052_v0  ;;  %1724 = vmatprep.mubr.msk.bf16.mxu0 %vm95_vm1, %v1940_v18  ;;  %v2224_v46 = vld [vmem:[%s2500_s6] ss:$0 sm:$0xff] }
   0x8   :  { %1745 = vmatpush3.bf16.msra.mxu0 %v2162_v22 }
   0x9   :  { %1733 = vmatmul.mubr.bf16.vlgmr.msra.gmra.mxu1 %v2054_v6  ;;  %1746 = vmatprep.subr.bf16.mxu0 %v2052_v0 }
   0xa   :  { %1740 = vmatprep.mubr.msk.bf16.mxu1 %vm2053_vm0, %v2052_v0  ;;  %1737 = vmatpush3.bf16.msra.mxu1 %v2156_v21 }
   0xb   :  { %1738 = vmatprep.subr.bf16.mxu1 %v2052_v0 }
   0xc   :  { %1747 = vmatpush3.bf16.msra.mxu0 %v2176_v25 }
   0xd   :  { %1760 = vmatprep.subr.bf16.mxu0 %v2052_v0 }
   0xe   :  { %1725 = vmatmul.mubr.msk.bf16.gmra.mxu0 %vm95_vm1, %v1941_v19  ;;  %1739 = vmatpush3.bf16.msra.mxu1 %v2169_v24 }
   0xf   :  { %1748 = vmatprep.mubr.msk.bf16.mxu0 %vm2053_vm0, %v2052_v0  ;;  %1752 = vmatprep.subr.bf16.mxu1 %v2052_v0 }
  0x16   :  { %1749 = vmatmul.mubr.bf16.vlgmr.msra.gmra.mxu0 %v2054_v6 }
  0x17   :  { %1761 = vmatpush3.bf16.msra.mxu0 %v2156_v21  ;;  %1764 = vmatprep.mubr.msk.bf16.mxu0 %vm2053_vm0, %v2052_v0 }
  0x18   :  { %1762 = vmatprep.subr.bf16.mxu0 %v2052_v0 }
  0x1b   :  { %1763 = vmatpush3.bf16.msra.mxu0 %v2169_v24 }
  0x1c   :  { %1776 = vmatprep.subr.bf16.mxu0 %v2052_v0 }
  0xc6   :  { %v2139_v7 = vpop.f32.mrf.mxu0 }
  0xc8   :  { %v142_v9 = vpop.f32.mrf.mxu0 }
  0xc9   :  { %v143_v10 = vadd.f32 %v2144_v8, %v142_v9  ;;  %v223_v11 = vpop.f32.mrf.mxu1 }
  0xca   :  { %v2211_v36 = vpop.f32.mrf.mxu0 }
  0xcb   :  { %v229_v12 = vadd.f32 %v223_v11, %v143_v10  ;;  %v1734_v13 = vpop.f32.mrf.mxu1 }
  0xcc   :  { %v145_v37 = vpop.f32.mrf.mxu0 }
  0xcd   :  { %v230_v14 = vmul.f32 0.5, %v229_v12  ;;  %v226_v15 = vpop.f32.mrf.mxu1  ;;  %v146_v54 = vadd.f32 %v2144_v8, %v145_v37  ;;  %v151_v37 = vadd.f32 %v2139_v7, %v2144_v8 }
  0xce   :  { %v2213_v38 = vpop.f32.mrf.mxu0 }
  0xcf   :  { %1947 = vtanh.f32 %v230_v14  ;;  %v1735_v16 = vpop.f32.mrf.mxu1 }
  0xd0   :  { %1949 = vtanh.f32 %v229_v12  ;;  %v2215_v39 = vpop.f32.mrf.mxu0 }
  0xd2   :  { %v2217_v40 = vpop.f32.mrf.mxu0 }
  0xd4   :  { %v2219_v41 = vpop.f32.mrf.mxu0 }
  0xd6   :  { %v348_v42 = vpop.f32.mrf.mxu0 }
  0xd8   :  { %v1750_v43 = vpop.f32.mrf.mxu0 }
  0xda   :  { %v351_v44 = vpop.f32.mrf.mxu0 }
  0xdc   :  { %v1948_v17 = vpop.eup %1947  ;;  %v1751_v45 = vpop.f32.mrf.mxu0 }
  0xdd   :  { %v232_v20 = vmul.f32 0.5, %v1948_v17  ;;  %v1950_v26 = vpop.eup %1949 }
  0xdf   :  { %v233_v23 = vadd.f32 0.5, %v232_v20 }
  0xe1   :  { %239 = vrot.lane.b32.xlu1 %v233_v23, %s2055_s10  ;;  %235 = vrot.lane.b32.xlu0 %v233_v23, %s2056_s11 }
  0xe5   :  { %237 = vrot.lane.b32.xlu0 %v1950_v26, %s2057_s4 }
 0x153   :  { %v236_v27 = vpop.permute.xlu0 %235  ;;  %v240_v33 = vpop.permute.xlu1 %239 }
 0x154   :  { %v241_v29 = vmul.f32 0.0, %v236_v27 }
 0x157   :  { %v238_v28 = vpop.permute.xlu0 %237 }
 0x158   :  { %v242_v30 = vmul.f32 %v238_v28, %v233_v23 }
 0x15a   :  { %v2194_v31 = vadd.f32 %v242_v30, %v241_v29 }
 0x15c   :  { %1951 = vtanh.f32 %v2194_v31 }
 0x169   :  { %v1952_v32 = vpop.eup %1951 }
 0x16a   :  { %v245_v34 = vmul.f32 %v1952_v32, %v240_v33 }
 0x16c   :  { %v246_v35 = vpack.c.bf16 %v245_v34, %v245_v34 }
 0x16e   :  { %1741 = vmatmul.mubr.msk.bf16.vlgmr.msra.gmra.mxu1 %vm185_vm2, %v246_v35 }
 0x16f   :  { %1753 = vmatpush3.bf16.msra.mxu1 %v2117_v2  ;;  %1756 = vmatprep.mubr.msk.bf16.mxu1 %vm2053_vm0, %v2052_v0 }
 0x170   :  { %1754 = vmatprep.subr.bf16.mxu1 %v2052_v0 }
 0x173   :  { %1755 = vmatpush3.bf16.msra.mxu1 %v2131_v5 }
 0x174   :  { %1768 = vmatprep.subr.bf16.mxu1 %v2052_v0 }
 0x176   :  { %1757 = vmatmul.mubr.msk.bf16.vlgmr.msra.gmra.mxu1 %vm185_vm2, %v246_v35 }
 0x177   :  { %1769 = vmatpush3.bf16.msra.mxu1 %v2162_v22  ;;  %1772 = vmatprep.mubr.msk.bf16.mxu1 %vm2053_vm0, %v2052_v0 }
 0x178   :  { %1770 = vmatprep.subr.bf16.mxu1 %v2052_v0 }
 0x17b   :  { %1771 = vmatpush3.bf16.msra.mxu1 %v2176_v25 }
 0x17c   :  { %1784 = vmatprep.subr.bf16.mxu1 %v2052_v0 }
 0x22e   :  { %v296_v47 = vpop.f32.mrf.mxu1 }
 0x22f   :  { %v297_v48 = vadd.f32 %v2224_v46, %v296_v47 }
 0x230   :  { %v1742_v49 = vpop.f32.mrf.mxu1 }
 0x231   :  { %v354_v50 = vadd.f32 %v348_v42, %v297_v48 }
 0x232   :  { %v299_v51 = vpop.f32.mrf.mxu1 }
 0x233   :  { %v355_v52 = vmul.f32 0.5, %v354_v50 }
 0x234   :  { %v1743_v53 = vpop.f32.mrf.mxu1 }
 0x235   :  { %1953 = vtanh.f32 %v355_v52 }
 0x236   :  { %v405_v55 = vpop.f32.mrf.mxu1 }
 0x237   :  { %v411_v56 = vadd.f32 %v405_v55, %v146_v54 }
 0x238   :  { %v1758_v57 = vpop.f32.mrf.mxu1 }
 0x239   :  { %v412_v58 = vmul.f32 0.5, %v411_v56  ;;  %1955 = vtanh.f32 %v411_v56 }
 0x23a   :  { %v408_v59 = vpop.f32.mrf.mxu1 }
 0x23b   :  { %1957 = vtanh.f32 %v412_v58 }
 0x23c   :  { %v1759_v60 = vpop.f32.mrf.mxu1  ;;  %1959 = vtanh.f32 %v354_v50 }
 0x242   :  { %v1954_v61 = vpop.eup %1953 }
 0x243   :  { %v357_v62 = vmul.f32 0.5, %v1954_v61 }
 0x245   :  { %v358_v3 = vadd.f32 0.5, %v357_v62 }
 0x246   :  { %v1956_v63 = vpop.eup %1955 }
 0x247   :  { %419 = vrot.lane.b32.xlu0 %v1956_v63, %s2057_s4 }
 0x248   :  { %v1958_v1 = vpop.eup %1957 }
 0x249   :  { %v414_v4 = vmul.f32 0.5, %v1958_v1  ;;  %v1960_v9 = vpop.eup %1959 }
 0x24b   :  { %360 = vrot.lane.b32.xlu0 %v358_v3, %s2056_s11  ;;  %v415_v6 = vadd.f32 0.5, %v414_v4 }
 0x24d   :  { %417 = vrot.lane.b32.xlu1 %v415_v6, %s2056_s11 }
 0x24f   :  { %364 = vrot.lane.b32.xlu0 %v358_v3, %s2055_s10 }
 0x251   :  { %421 = vrot.lane.b32.xlu1 %v415_v6, %s2055_s10 }
 0x255   :  { %362 = vrot.lane.b32.xlu1 %v1960_v9, %s2057_s4 }
 0x2b9   :  { %v420_v10 = vpop.permute.xlu0 %419 }
 0x2ba   :  { %v424_v12 = vmul.f32 %v420_v10, %v415_v6 }
 0x2bd   :  { %v361_v16 = vpop.permute.xlu0 %360 }
 0x2be   :  { %v366_v18 = vmul.f32 0.0, %v361_v16 }
 0x2bf   :  { %v418_v11 = vpop.permute.xlu1 %417 }
 0x2c0   :  { %v423_v13 = vmul.f32 %v418_v11, %v2194_v31 }
 0x2c1   :  { %v365_v29 = vpop.permute.xlu0 %364 }
 0x2c2   :  { %v2235_v14 = vadd.f32 %v424_v12, %v423_v13 }
 0x2c3   :  { %v422_v15 = vpop.permute.xlu1 %421 }
 0x2c4   :  { %1961 = vtanh.f32 %v2235_v14 }
 0x2c7   :  { %v363_v17 = vpop.permute.xlu1 %362 }
 0x2c8   :  { %v367_v19 = vmul.f32 %v363_v17, %v358_v3 }
 0x2ca   :  { %v2238_v20 = vadd.f32 %v367_v19, %v366_v18 }
 0x2cc   :  { %1963 = vtanh.f32 %v2238_v20 }
 0x2d1   :  { %v1962_v23 = vpop.eup %1961 }
 0x2d2   :  { %v427_v26 = vmul.f32 %v1962_v23, %v422_v15 }
 0x2d4   :  { %v428_v27 = vpack.c.bf16 %v427_v26, %v427_v26 }
 0x2d6   :  { %1765 = vmatmul.mubr.msk.bf16.vlgmr.msra.gmra.mxu0 %vm185_vm2, %v428_v27 }
 0x2d7   :  { %1777 = vmatpush3.bf16.msra.mxu0 %v2117_v2  ;;  %1780 = vmatprep.mubr.msk.bf16.mxu0 %vm2053_vm0, %v2052_v0 }
 0x2d8   :  { %1778 = vmatprep.subr.bf16.mxu0 %v2052_v0 }
 0x2d9   :  { %v1964_v28 = vpop.eup %1963 }
 0x2da   :  { %v370_v30 = vmul.f32 %v1964_v28, %v365_v29 }
 0x2db   :  { %1779 = vmatpush3.bf16.msra.mxu0 %v2131_v5 }
 0x2dc   :  { %v472_v31 = vpack.c.bf16 %v370_v30, %v370_v30  ;;  %1792 = vmatprep.subr.bf16.mxu0 %v2052_v0  ;;  %v154_v30 = vadd.f32 %v2211_v36, %v2144_v8 }
 0x2de   :  { %1773 = vmatmul.mubr.msk.bf16.vlgmr.msra.gmra.mxu1 %vm185_vm2, %v472_v31  ;;  %1781 = vmatmul.mubr.msk.bf16.vlgmr.msra.gmra.mxu0 %vm185_vm2, %v428_v27 }
 0x2df   :  { %1785 = vmatpush3.bf16.msra.mxu1 %v2156_v21  ;;  %1788 = vmatprep.mubr.msk.bf16.mxu1 %vm2053_vm0, %v2052_v0 }
 0x2e0   :  { %1786 = vmatprep.subr.bf16.mxu1 %v2052_v0  ;;  %1793 = vmatpush3.bf16.msra.mxu0 %v2162_v22 }
 0x2e1   :  { %1794 = vmatprep.subr.bf16.mxu0 %v2052_v0  ;;  %1796 = vmatprep.mubr.msk.bf16.mxu0 %vm2053_vm0, %v2052_v0 }
 0x2e3   :  { %1787 = vmatpush3.bf16.msra.mxu1 %v2169_v24 }
 0x2e4   :  { %1800 = vmatprep.subr.bf16.mxu1 %v2052_v0  ;;  %1795 = vmatpush3.bf16.msra.mxu0 %v2176_v25 }
 0x2e5   :  { %1808 = vmatprep.subr.bf16.mxu0 %v2052_v0 }
 0x396   :  { %v466_v32 = vpop.f32.mrf.mxu0 }
 0x397   :  { %v467_v42 = vadd.f32 %v2224_v46, %v466_v32 }
 0x398   :  { %v1766_v33 = vpop.f32.mrf.mxu0 }
 0x39a   :  { %v469_v34 = vpop.f32.mrf.mxu0 }
 0x39c   :  { %v1767_v35 = vpop.f32.mrf.mxu0 }
 0x39e   :  { %v510_v43 = vpop.f32.mrf.mxu1  ;;  %v567_v44 = vpop.f32.mrf.mxu0 }
 0x39f   :  { %v516_v45 = vadd.f32 %v510_v43, %v467_v42  ;;  %v573_v47 = vadd.f32 %v567_v44, %v151_v37 }
 0x3a0   :  { %v1774_v48 = vpop.f32.mrf.mxu1  ;;  %v1782_v49 = vpop.f32.mrf.mxu0 }
 0x3a1   :  { %v517_v50 = vmul.f32 0.5, %v516_v45  ;;  %v574_v51 = vmul.f32 0.5, %v573_v47  ;;  %1965 = vtanh.f32 %v573_v47 }
 0x3a2   :  { %v513_v52 = vpop.f32.mrf.mxu1  ;;  %v570_v53 = vpop.f32.mrf.mxu0 }
 0x3a3   :  { %1967 = vtanh.f32 %v517_v50 }
 0x3a4   :  { %1969 = vtanh.f32 %v574_v51  ;;  %v1775_v54 = vpop.f32.mrf.mxu1  ;;  %v1783_v55 = vpop.f32.mrf.mxu0 }
 0x3a5   :  { %1971 = vtanh.f32 %v516_v45 }
 0x3ae   :  { %v1966_v56 = vpop.eup %1965 }
 0x3af   :  { %581 = vrot.lane.b32.xlu0 %v1966_v56, %s2057_s4 }
 0x3b0   :  { %v1968_v57 = vpop.eup %1967 }
 0x3b1   :  { %v1970_v7 = vpop.eup %1969  ;;  %v519_v58 = vmul.f32 0.5, %v1968_v57 }
 0x3b2   :  { %v576_v59 = vmul.f32 0.5, %v1970_v7  ;;  %v1972_v62 = vpop.eup %1971 }
 0x3b3   :  { %v520_v60 = vadd.f32 0.5, %v519_v58 }
 0x3b4   :  { %v577_v61 = vadd.f32 0.5, %v576_v59 }
 0x3b5   :  { %522 = vrot.lane.b32.xlu0 %v520_v60, %s2056_s11 }
 0x3b6   :  { %579 = vrot.lane.b32.xlu1 %v577_v61, %s2056_s11 }
 0x3b9   :  { %526 = vrot.lane.b32.xlu0 %v520_v60, %s2055_s10 }
 0x3ba   :  { %583 = vrot.lane.b32.xlu1 %v577_v61, %s2055_s10 }
 0x3be   :  { %524 = vrot.lane.b32.xlu1 %v1972_v62, %s2057_s4 }
 0x421   :  { %v582_v63 = vpop.permute.xlu0 %581 }
 0x422   :  { %v586_v3 = vmul.f32 %v582_v63, %v577_v61 }
 0x427   :  { %v523_v10 = vpop.permute.xlu0 %522 }
 0x428   :  { %v580_v1 = vpop.permute.xlu1 %579  ;;  %v528_v12 = vmul.f32 %v523_v10, %v2238_v20 }
 0x429   :  { %v585_v4 = vmul.f32 %v580_v1, %v2235_v14 }
 0x42b   :  { %v2272_v6 = vadd.f32 %v586_v3, %v585_v4  ;;  %v527_v19 = vpop.permute.xlu0 %526 }
 0x42c   :  { %v584_v9 = vpop.permute.xlu1 %583 }
 0x42d   :  { %1973 = vtanh.f32 %v2272_v6 }
 0x430   :  { %v525_v11 = vpop.permute.xlu1 %524 }
 0x431   :  { %v529_v13 = vmul.f32 %v525_v11, %v520_v60 }
 0x433   :  { %v2276_v15 = vadd.f32 %v529_v13, %v528_v12 }
 0x435   :  { %1975 = vtanh.f32 %v2276_v15 }
 0x43a   :  { %v1974_v16 = vpop.eup %1973 }
 0x43b   :  { %v589_v17 = vmul.f32 %v1974_v16, %v584_v9 }
 0x43d   :  { %v590_v18 = vpack.c.bf16 %v589_v17, %v589_v17 }
 0x43f   :  { %1789 = vmatmul.mubr.msk.bf16.vlgmr.msra.gmra.mxu1 %vm185_vm2, %v590_v18 }
 0x440   :  { %1801 = vmatpush3.bf16.msra.mxu1 %v2117_v2  ;;  %1804 = vmatprep.mubr.msk.bf16.mxu1 %vm2053_vm0, %v2052_v0 }
 0x441   :  { %1802 = vmatprep.subr.bf16.mxu1 %v2052_v0 }
 0x442   :  { %v1976_v14 = vpop.eup %1975 }
 0x443   :  { %v532_v20 = vmul.f32 %v1976_v14, %v527_v19  ;;  %v159_v19 = vadd.f32 %v2144_v8, %v2215_v39 }
 0x444   :  { %1803 = vmatpush3.bf16.msra.mxu1 %v2131_v5 }
 0x445   :  { %v634_v23 = vpack.c.bf16 %v532_v20, %v532_v20  ;;  %1816 = vmatprep.subr.bf16.mxu1 %v2052_v0 }
 0x447   :  { %1797 = vmatmul.mubr.msk.bf16.vlgmr.msra.gmra.mxu0 %vm185_vm2, %v634_v23  ;;  %1805 = vmatmul.mubr.msk.bf16.vlgmr.msra.gmra.mxu1 %vm185_vm2, %v590_v18 }
 0x448   :  { %1809 = vmatpush3.bf16.msra.mxu0 %v2156_v21  ;;  %1812 = vmatprep.mubr.msk.bf16.mxu0 %vm2053_vm0, %v2052_v0 }
 0x449   :  { %1810 = vmatprep.subr.bf16.mxu0 %v2052_v0  ;;  %1817 = vmatpush3.bf16.msra.mxu1 %v2162_v22 }
 0x44a   :  { %1818 = vmatprep.subr.bf16.mxu1 %v2052_v0  ;;  %1820 = vmatprep.mubr.msk.bf16.mxu1 %vm2053_vm0, %v2052_v0 }
 0x44c   :  { %1811 = vmatpush3.bf16.msra.mxu0 %v2169_v24 }
 0x44d   :  { %1824 = vmatprep.subr.bf16.mxu0 %v2052_v0  ;;  %1819 = vmatpush3.bf16.msra.mxu1 %v2176_v25 }
 0x44e   :  { %1832 = vmatprep.subr.bf16.mxu1 %v2052_v0 }
 0x4ff   :  { %v628_v26 = vpop.f32.mrf.mxu1 }
 0x500   :  { %v629_v31 = vadd.f32 %v2224_v46, %v628_v26 }
 0x501   :  { %v1790_v27 = vpop.f32.mrf.mxu1 }
 0x503   :  { %v631_v28 = vpop.f32.mrf.mxu1 }
 0x505   :  { %v1791_v29 = vpop.f32.mrf.mxu1 }
 0x507   :  { %v672_v32 = vpop.f32.mrf.mxu0  ;;  %v729_v33 = vpop.f32.mrf.mxu1 }
 0x508   :  { %v678_v34 = vadd.f32 %v672_v32, %v629_v31  ;;  %v735_v35 = vadd.f32 %v729_v33, %v154_v30 }
 0x509   :  { %v1798_v37 = vpop.f32.mrf.mxu0  ;;  %v1806_v42 = vpop.f32.mrf.mxu1 }
 0x50a   :  { %v679_v43 = vmul.f32 0.5, %v678_v34  ;;  %v736_v44 = vmul.f32 0.5, %v735_v35  ;;  %1977 = vtanh.f32 %v735_v35 }
 0x50b   :  { %v675_v45 = vpop.f32.mrf.mxu0  ;;  %v732_v47 = vpop.f32.mrf.mxu1 }
 0x50c   :  { %1979 = vtanh.f32 %v679_v43 }
 0x50d   :  { %1981 = vtanh.f32 %v736_v44  ;;  %v1799_v48 = vpop.f32.mrf.mxu0  ;;  %v1807_v49 = vpop.f32.mrf.mxu1 }
 0x50e   :  { %1983 = vtanh.f32 %v678_v34 }
 0x517   :  { %v1978_v50 = vpop.eup %1977 }
 0x518   :  { %743 = vrot.lane.b32.xlu0 %v1978_v50, %s2057_s4 }
 0x519   :  { %v1980_v51 = vpop.eup %1979 }
 0x51a   :  { %v1982_v36 = vpop.eup %1981  ;;  %v681_v52 = vmul.f32 0.5, %v1980_v51 }
 0x51b   :  { %v738_v53 = vmul.f32 0.5, %v1982_v36  ;;  %v1984_v56 = vpop.eup %1983 }
 0x51c   :  { %v682_v54 = vadd.f32 0.5, %v681_v52 }
 0x51d   :  { %v739_v55 = vadd.f32 0.5, %v738_v53 }
 0x51e   :  { %684 = vrot.lane.b32.xlu0 %v682_v54, %s2056_s11 }
 0x51f   :  { %741 = vrot.lane.b32.xlu1 %v739_v55, %s2056_s11 }
 0x522   :  { %688 = vrot.lane.b32.xlu0 %v682_v54, %s2055_s10 }
 0x523   :  { %745 = vrot.lane.b32.xlu1 %v739_v55, %s2055_s10 }
 0x527   :  { %686 = vrot.lane.b32.xlu1 %v1984_v56, %s2057_s4 }
 0x58a   :  { %v744_v57 = vpop.permute.xlu0 %743 }
 0x58b   :  { %v748_v58 = vmul.f32 %v744_v57, %v739_v55 }
 0x590   :  { %v685_v62 = vpop.permute.xlu0 %684 }
 0x591   :  { %v742_v7 = vpop.permute.xlu1 %741  ;;  %v690_v1 = vmul.f32 %v685_v62, %v2276_v15 }
 0x592   :  { %v747_v59 = vmul.f32 %v742_v7, %v2272_v6 }
 0x594   :  { %v2310_v60 = vadd.f32 %v748_v58, %v747_v59  ;;  %v689_v12 = vpop.permute.xlu0 %688 }
 0x595   :  { %v746_v61 = vpop.permute.xlu1 %745 }
 0x596   :  { %1985 = vtanh.f32 %v2310_v60 }
 0x599   :  { %v687_v63 = vpop.permute.xlu1 %686 }
 0x59a   :  { %v691_v3 = vmul.f32 %v687_v63, %v682_v54 }
 0x59c   :  { %v2314_v4 = vadd.f32 %v691_v3, %v690_v1 }
 0x59e   :  { %1987 = vtanh.f32 %v2314_v4 }
 0x5a3   :  { %v1986_v9 = vpop.eup %1985 }
 0x5a4   :  { %v751_v10 = vmul.f32 %v1986_v9, %v746_v61 }
 0x5a6   :  { %v752_v11 = vpack.c.bf16 %v751_v10, %v751_v10 }
 0x5a8   :  { %1813 = vmatmul.mubr.msk.bf16.vlgmr.msra.gmra.mxu0 %vm185_vm2, %v752_v11 }
 0x5a9   :  { %1825 = vmatpush3.bf16.msra.mxu0 %v2117_v2  ;;  %1828 = vmatprep.mubr.msk.bf16.mxu0 %vm2053_vm0, %v2052_v0 }
 0x5aa   :  { %1826 = vmatprep.subr.bf16.mxu0 %v2052_v0 }
 0x5ab   :  { %v1988_v6 = vpop.eup %1987 }
 0x5ac   :  { %v694_v13 = vmul.f32 %v1988_v6, %v689_v12  ;;  %v162_v6 = vadd.f32 %v2144_v8, %v2219_v41 }
 0x5ad   :  { %1827 = vmatpush3.bf16.msra.mxu0 %v2131_v5 }
 0x5ae   :  { %v796_v15 = vpack.c.bf16 %v694_v13, %v694_v13  ;;  %1840 = vmatprep.subr.bf16.mxu0 %v2052_v0 }
 0x5b0   :  { %1821 = vmatmul.mubr.msk.bf16.vlgmr.msra.gmra.mxu1 %vm185_vm2, %v796_v15  ;;  %1829 = vmatmul.mubr.msk.bf16.vlgmr.msra.gmra.mxu0 %vm185_vm2, %v752_v11 }
 0x5b1   :  { %1833 = vmatpush3.bf16.msra.mxu1 %v2156_v21  ;;  %1836 = vmatprep.mubr.msk.bf16.mxu1 %vm2053_vm0, %v2052_v0 }
 0x5b2   :  { %1834 = vmatprep.subr.bf16.mxu1 %v2052_v0  ;;  %1841 = vmatpush3.bf16.msra.mxu0 %v2162_v22 }
 0x5b3   :  { %1842 = vmatprep.subr.bf16.mxu0 %v2052_v0  ;;  %1844 = vmatprep.mubr.msk.bf16.mxu0 %vm2053_vm0, %v2052_v0 }
 0x5b5   :  { %1835 = vmatpush3.bf16.msra.mxu1 %v2169_v24 }
 0x5b6   :  { %1848 = vmatprep.subr.bf16.mxu1 %v2052_v0  ;;  %1843 = vmatpush3.bf16.msra.mxu0 %v2176_v25 }
 0x5b7   :  { %1856 = vmatprep.subr.bf16.mxu0 %v2052_v0 }
 0x668   :  { %v790_v16 = vpop.f32.mrf.mxu0 }
 0x669   :  { %v791_v20 = vadd.f32 %v2224_v46, %v790_v16 }
 0x66a   :  { %v1814_v17 = vpop.f32.mrf.mxu0 }
 0x66c   :  { %v793_v18 = vpop.f32.mrf.mxu0 }
 0x66e   :  { %v1815_v14 = vpop.f32.mrf.mxu0 }
 0x670   :  { %v834_v23 = vpop.f32.mrf.mxu1  ;;  %v891_v26 = vpop.f32.mrf.mxu0 }
 0x671   :  { %v840_v27 = vadd.f32 %v834_v23, %v791_v20  ;;  %v897_v28 = vadd.f32 %v891_v26, %v159_v19 }
 0x672   :  { %v1822_v29 = vpop.f32.mrf.mxu1  ;;  %v1830_v30 = vpop.f32.mrf.mxu0 }
 0x673   :  { %v841_v31 = vmul.f32 0.5, %v840_v27  ;;  %v898_v32 = vmul.f32 0.5, %v897_v28  ;;  %1989 = vtanh.f32 %v897_v28 }
 0x674   :  { %v837_v33 = vpop.f32.mrf.mxu1  ;;  %v894_v34 = vpop.f32.mrf.mxu0 }
 0x675   :  { %1991 = vtanh.f32 %v841_v31 }
 0x676   :  { %1993 = vtanh.f32 %v898_v32  ;;  %v1823_v35 = vpop.f32.mrf.mxu1  ;;  %v1831_v37 = vpop.f32.mrf.mxu0 }
 0x677   :  { %1995 = vtanh.f32 %v840_v27 }
 0x680   :  { %v1990_v42 = vpop.eup %1989 }
 0x681   :  { %905 = vrot.lane.b32.xlu0 %v1990_v42, %s2057_s4 }
 0x682   :  { %v1992_v43 = vpop.eup %1991 }
 0x683   :  { %v1994_v39 = vpop.eup %1993  ;;  %v843_v44 = vmul.f32 0.5, %v1992_v43 }
 0x684   :  { %v900_v45 = vmul.f32 0.5, %v1994_v39  ;;  %v1996_v49 = vpop.eup %1995 }
 0x685   :  { %v844_v47 = vadd.f32 0.5, %v843_v44 }
 0x686   :  { %v901_v48 = vadd.f32 0.5, %v900_v45 }
 0x687   :  { %846 = vrot.lane.b32.xlu0 %v844_v47, %s2056_s11 }
 0x688   :  { %903 = vrot.lane.b32.xlu1 %v901_v48, %s2056_s11 }
 0x68b   :  { %850 = vrot.lane.b32.xlu0 %v844_v47, %s2055_s10 }
 0x68c   :  { %907 = vrot.lane.b32.xlu1 %v901_v48, %s2055_s10 }
 0x690   :  { %848 = vrot.lane.b32.xlu1 %v1996_v49, %s2057_s4 }
 0x6f3   :  { %v906_v50 = vpop.permute.xlu0 %905 }
 0x6f4   :  { %v910_v36 = vmul.f32 %v906_v50, %v901_v48 }
 0x6f9   :  { %v847_v55 = vpop.permute.xlu0 %846 }
 0x6fa   :  { %v904_v51 = vpop.permute.xlu1 %903  ;;  %v852_v57 = vmul.f32 %v847_v55, %v2314_v4 }
 0x6fb   :  { %v909_v52 = vmul.f32 %v904_v51, %v2310_v60 }
 0x6fd   :  { %v2348_v53 = vadd.f32 %v910_v36, %v909_v52  ;;  %v851_v63 = vpop.permute.xlu0 %850 }
 0x6fe   :  { %v908_v54 = vpop.permute.xlu1 %907 }
 0x6ff   :  { %1997 = vtanh.f32 %v2348_v53 }
 0x702   :  { %v849_v56 = vpop.permute.xlu1 %848 }
 0x703   :  { %v853_v7 = vmul.f32 %v849_v56, %v844_v47 }
 0x705   :  { %v2352_v58 = vadd.f32 %v853_v7, %v852_v57 }
 0x707   :  { %1999 = vtanh.f32 %v2352_v58 }
 0x70c   :  { %v1998_v59 = vpop.eup %1997 }
 0x70d   :  { %v913_v61 = vmul.f32 %v1998_v59, %v908_v54 }
 0x70f   :  { %v914_v62 = vpack.c.bf16 %v913_v61, %v913_v61 }
 0x711   :  { %1837 = vmatmul.mubr.msk.bf16.vlgmr.msra.gmra.mxu1 %vm185_vm2, %v914_v62 }
 0x712   :  { %1849 = vmatpush3.bf16.msra.mxu1 %v2117_v2  ;;  %1852 = vmatprep.mubr.msk.bf16.mxu1 %vm2053_vm0, %v2052_v0 }
 0x713   :  { %1850 = vmatprep.subr.bf16.mxu1 %v2052_v0 }
 0x714   :  { %v2000_v60 = vpop.eup %1999 }
 0x715   :  { %v856_v1 = vmul.f32 %v2000_v60, %v851_v63  ;;  %v167_v63 = vadd.f32 %v2213_v38, %v2144_v8 }
 0x716   :  { %1851 = vmatpush3.bf16.msra.mxu1 %v2131_v5 }
 0x717   :  { %v958_v3 = vpack.c.bf16 %v856_v1, %v856_v1  ;;  %1864 = vmatprep.subr.bf16.mxu1 %v2052_v0 }
 0x719   :  { %1845 = vmatmul.mubr.msk.bf16.vlgmr.msra.gmra.mxu0 %vm185_vm2, %v958_v3  ;;  %1853 = vmatmul.mubr.msk.bf16.vlgmr.msra.gmra.mxu1 %vm185_vm2, %v914_v62 }
 0x71a   :  { %1857 = vmatpush3.bf16.msra.mxu0 %v2156_v21  ;;  %1865 = vmatpush3.bf16.msra.mxu1 %v2162_v22 }
 0x71b   :  { %1858 = vmatprep.subr.bf16.mxu0 %v2052_v0  ;;  %1860 = vmatprep.mubr.msk.bf16.mxu0 %vm2053_vm0, %v2052_v0 }
 0x71c   :  { %1866 = vmatprep.subr.bf16.mxu1 %v2052_v0  ;;  %1868 = vmatprep.mubr.msk.bf16.mxu1 %vm2053_vm0, %v2052_v0 }
 0x71e   :  { %1859 = vmatpush3.bf16.msra.mxu0 %v2169_v24  ;;  %1867 = vmatpush3.bf16.msra.mxu1 %v2176_v25 }
 0x71f   :  { %1872 = vmatprep.subr.bf16.mxu0 %v2052_v0  ;;  %1880 = vmatprep.subr.bf16.mxu1 %v2052_v0 }
 0x7d1   :  { %v952_v4 = vpop.f32.mrf.mxu1 }
 0x7d2   :  { %v953_v12 = vadd.f32 %v2224_v46, %v952_v4 }
 0x7d3   :  { %v1838_v9 = vpop.f32.mrf.mxu1 }
 0x7d5   :  { %v955_v10 = vpop.f32.mrf.mxu1 }
 0x7d7   :  { %v1839_v11 = vpop.f32.mrf.mxu1 }
 0x7d9   :  { %v996_v13 = vpop.f32.mrf.mxu0  ;;  %v1053_v15 = vpop.f32.mrf.mxu1 }
 0x7da   :  { %v1002_v16 = vadd.f32 %v996_v13, %v953_v12  ;;  %v1059_v17 = vadd.f32 %v1053_v15, %v162_v6 }
 0x7db   :  { %v1846_v18 = vpop.f32.mrf.mxu0  ;;  %v1854_v14 = vpop.f32.mrf.mxu1 }
 0x7dc   :  { %v1003_v19 = vmul.f32 0.5, %v1002_v16  ;;  %v1060_v20 = vmul.f32 0.5, %v1059_v17  ;;  %2001 = vtanh.f32 %v1059_v17 }
 0x7dd   :  { %v999_v23 = vpop.f32.mrf.mxu0  ;;  %v1056_v26 = vpop.f32.mrf.mxu1 }
 0x7de   :  { %2003 = vtanh.f32 %v1003_v19 }
 0x7df   :  { %2005 = vtanh.f32 %v1060_v20  ;;  %v1847_v27 = vpop.f32.mrf.mxu0  ;;  %v1855_v28 = vpop.f32.mrf.mxu1 }
 0x7e0   :  { %2007 = vtanh.f32 %v1002_v16 }
 0x7e9   :  { %v2002_v29 = vpop.eup %2001 }
 0x7ea   :  { %1067 = vrot.lane.b32.xlu0 %v2002_v29, %s2057_s4 }
 0x7eb   :  { %v2004_v41 = vpop.eup %2003 }
 0x7ec   :  { %v2006_v30 = vpop.eup %2005  ;;  %v1005_v32 = vmul.f32 0.5, %v2004_v41 }
 0x7ed   :  { %v1062_v31 = vmul.f32 0.5, %v2006_v30  ;;  %v2008_v33 = vpop.eup %2007 }
 0x7ee   :  { %1010 = vrot.lane.b32.xlu0 %v2008_v33, %s2057_s4  ;;  %v1006_v35 = vadd.f32 0.5, %v1005_v32 }
 0x7ef   :  { %v1063_v34 = vadd.f32 0.5, %v1062_v31 }
 0x7f1   :  { %1065 = vrot.lane.b32.xlu1 %v1063_v34, %s2056_s11 }
 0x7f2   :  { %1012 = vrot.lane.b32.xlu0 %v1006_v35, %s2055_s10 }
 0x7f5   :  { %1008 = vrot.lane.b32.xlu1 %v1006_v35, %s2056_s11 }
 0x7f9   :  { %1069 = vrot.lane.b32.xlu1 %v1063_v34, %s2055_s10 }
 0x85c   :  { %v1068_v37 = vpop.permute.xlu0 %1067 }
 0x85d   :  { %v1072_v43 = vmul.f32 %v1068_v37, %v1063_v34 }
 0x860   :  { %v1011_v44 = vpop.permute.xlu0 %1010 }
 0x861   :  { %v1015_v48 = vmul.f32 %v1011_v44, %v1006_v35  ;;  %v2049_v44 = vld [vmem:[%s2495_s2 + $0x8] sm:$0xff]  }
 0x863   :  { %v1066_v42 = vpop.permute.xlu1 %1065 }
 0x864   :  { %v1071_v39 = vmul.f32 %v1066_v42, %v2348_v53  ;;  %v1013_v56 = vpop.permute.xlu0 %1012 }
 0x866   :  { %v2386_v45 = vadd.f32 %v1072_v43, %v1071_v39 }
 0x867   :  { %v1009_v47 = vpop.permute.xlu1 %1008 }
 0x868   :  { %2009 = vtanh.f32 %v2386_v45  ;;  %v1014_v49 = vmul.f32 %v1009_v47, %v2352_v58  ;;  %v2050_v47 = vld [vmem:[%s2495_s2] sm:$0xff]  }
 0x86a   :  { %v2390_v50 = vadd.f32 %v1015_v48, %v1014_v49 }
 0x86b   :  { %v1070_v36 = vpop.permute.xlu1 %1069 }
 0x86c   :  { %2011 = vtanh.f32 %v2390_v50 }
 0x875   :  { %v2010_v51 = vpop.eup %2009 }
 0x876   :  { %v1075_v52 = vmul.f32 %v2010_v51, %v1070_v36 }
 0x878   :  { %v1076_v54 = vpack.c.bf16 %v1075_v52, %v1075_v52 }
 0x879   :  { %v2012_v55 = vpop.eup %2011 }
 0x87a   :  { %1861 = vmatmul.mubr.msk.bf16.vlgmr.msra.gmra.mxu0 %vm185_vm2, %v1076_v54  ;;  %v1018_v53 = vmul.f32 %v2012_v55, %v1013_v56 }
 0x87b   :  { %1873 = vmatpush3.bf16.msra.mxu0 %v2117_v2  ;;  %1876 = vmatprep.mubr.msk.bf16.mxu0 %vm2053_vm0, %v2052_v0 }
 0x87c   :  { %1874 = vmatprep.subr.bf16.mxu0 %v2052_v0  ;;  %v1120_v57 = vpack.c.bf16 %v1018_v53, %v1018_v53 }
 0x87e   :  { %1869 = vmatmul.mubr.msk.bf16.vlgmr.msra.gmra.mxu1 %vm185_vm2, %v1120_v57 }
 0x87f   :  { %1875 = vmatpush3.bf16.msra.mxu0 %v2131_v5  ;;  %1881 = vmatpush3.bf16.msra.mxu1 %v2156_v21 }
 0x880   :  { %1882 = vmatprep.subr.bf16.mxu1 %v2052_v0  ;;  %1888 = vmatprep.subr.bf16.mxu0 %v2052_v0 }
 0x881   :  { %1884 = vmatprep.mubr.msk.bf16.mxu1 %vm2053_vm0, %v2052_v0 }
 0x882   :  { %1877 = vmatmul.mubr.msk.bf16.vlgmr.msra.gmra.mxu0 %vm185_vm2, %v1076_v54 }
 0x883   :  { %1883 = vmatpush3.bf16.msra.mxu1 %v2169_v24  ;;  %1889 = vmatpush3.bf16.msra.mxu0 %v2162_v22 }
 0x884   :  { %1896 = vmatprep.subr.bf16.mxu1 %v2052_v0  ;;  %1890 = vmatprep.subr.bf16.mxu0 %v2052_v0 }
 0x885   :  { %1892 = vmatprep.mubr.msk.bf16.mxu0 %vm2053_vm0, %v2052_v0 }
 0x887   :  { %1891 = vmatpush3.bf16.msra.mxu0 %v2176_v25 }
 0x888   :  { %1904 = vmatprep.subr.bf16.mxu0 %v2052_v0 }
 0x93a   :  { %v1114_v2 = vpop.f32.mrf.mxu0 }
 0x93b   :  { %v1115_v7 = vadd.f32 %v2224_v46, %v1114_v2 }
 0x93c   :  { %v1862_v5 = vpop.f32.mrf.mxu0 }
 0x93e   :  { %v1117_v58 = vpop.f32.mrf.mxu0  ;;  %v1158_v59 = vpop.f32.mrf.mxu1 }
 0x93f   :  { %v1164_v61 = vadd.f32 %v1158_v59, %v1115_v7 }
 0x940   :  { %v1863_v62 = vpop.f32.mrf.mxu0  ;;  %v1870_v60 = vpop.f32.mrf.mxu1 }
 0x941   :  { %v1165_v1 = vmul.f32 0.5, %v1164_v61 }
 0x942   :  { %v1161_v3 = vpop.f32.mrf.mxu1  ;;  %v1215_v4 = vpop.f32.mrf.mxu0 }
 0x943   :  { %v1221_v9 = vadd.f32 %v1215_v4, %v167_v63  ;;  %2013 = vtanh.f32 %v1165_v1 }
 0x944   :  { %v1871_v10 = vpop.f32.mrf.mxu1  ;;  %v1878_v11 = vpop.f32.mrf.mxu0 }
 0x945   :  { %v1222_v6 = vmul.f32 0.5, %v1221_v9  ;;  %2015 = vtanh.f32 %v1221_v9 }
 0x946   :  { %v1218_v12 = vpop.f32.mrf.mxu0 }
 0x947   :  { %2017 = vtanh.f32 %v1222_v6 }
 0x948   :  { %v1879_v13 = vpop.f32.mrf.mxu0  ;;  %2019 = vtanh.f32 %v1164_v61 }
 0x950   :  { %v2014_v15 = vpop.eup %2013 }
 0x951   :  { %v1167_v8 = vmul.f32 0.5, %v2014_v15 }
 0x952   :  { %v2016_v16 = vpop.eup %2015 }
 0x953   :  { %1229 = vrot.lane.b32.xlu0 %v2016_v16, %s2057_s4  ;;  %v1168_v19 = vadd.f32 0.5, %v1167_v8 }
 0x954   :  { %v2018_v17 = vpop.eup %2017 }
 0x955   :  { %v1224_v18 = vmul.f32 0.5, %v2018_v17  ;;  %v2020_v38 = vpop.eup %2019 }
 0x957   :  { %1172 = vrot.lane.b32.xlu0 %v2020_v38, %s2057_s4  ;;  %v1225_v14 = vadd.f32 0.5, %v1224_v18 }
 0x959   :  { %1227 = vrot.lane.b32.xlu1 %v1225_v14, %s2056_s11 }
 0x95b   :  { %1174 = vrot.lane.b32.xlu0 %v1168_v19, %s2055_s10 }
 0x95d   :  { %1170 = vrot.lane.b32.xlu1 %v1168_v19, %s2056_s11 }
 0x961   :  { %1231 = vrot.lane.b32.xlu1 %v1225_v14, %s2055_s10 }
 0x9c5   :  { %v1230_v20 = vpop.permute.xlu0 %1229 }
 0x9c6   :  { %v1234_v26 = vmul.f32 %v1230_v20, %v1225_v14 }
 0x9c9   :  { %v1173_v28 = vpop.permute.xlu0 %1172 }
 0x9ca   :  { %v1177_v30 = vmul.f32 %v1173_v28, %v1168_v19 }
 0x9cb   :  { %v1228_v23 = vpop.permute.xlu1 %1227 }
 0x9cc   :  { %v1233_v27 = vmul.f32 %v1228_v23, %v2386_v45 }
 0x9cd   :  { %v1175_v43 = vpop.permute.xlu0 %1174 }
 0x9ce   :  { %v2424_v29 = vadd.f32 %v1234_v26, %v1233_v27 }
 0x9cf   :  { %v1171_v41 = vpop.permute.xlu1 %1170 }
 0x9d0   :  { %2021 = vtanh.f32 %v2424_v29  ;;  %v1176_v31 = vmul.f32 %v1171_v41, %v2390_v50 }
 0x9d2   :  { %v2428_v32 = vadd.f32 %v1177_v30, %v1176_v31 }
 0x9d3   :  { %v1232_v34 = vpop.permute.xlu1 %1231 }
 0x9d4   :  { %2023 = vtanh.f32 %v2428_v32 }
 0x9dd   :  { %v2022_v33 = vpop.eup %2021 }
 0x9de   :  { %v1237_v35 = vmul.f32 %v2022_v33, %v1232_v34 }
 0x9e0   :  { %v1238_v37 = vpack.c.bf16 %v1237_v35, %v1237_v35 }
 0x9e1   :  { %v2024_v42 = vpop.eup %2023 }
 0x9e2   :  { %1885 = vmatmul.mubr.msk.bf16.vlgmr.msra.gmra.mxu1 %vm185_vm2, %v1238_v37  ;;  %v1180_v39 = vmul.f32 %v2024_v42, %v1175_v43 }
 0x9e3   :  { %1897 = vmatpush3.bf16.msra.mxu1 %v2049_v44  ;;  %1900 = vmatprep.mubr.msk.bf16.mxu1 %vm2053_vm0, %v2052_v0 }
 0x9e4   :  { %1898 = vmatprep.subr.bf16.mxu1 %v2052_v0  ;;  %v1282_v45 = vpack.c.bf16 %v1180_v39, %v1180_v39 }
 0x9e6   :  { %1893 = vmatmul.mubr.msk.bf16.vlgmr.msra.gmra.mxu0 %vm185_vm2, %v1282_v45  ;;  %v1946_v45 = vld [vmem:[%s2501_s7] sm:$0xff]  }
 0x9e7   :  { %1899 = vmatpush3.bf16.msra.mxu1 %v2050_v47  ;;  %1905 = vmatpush3.bf16.msra.mxu0 %v2156_v21 }
 0x9e8   :  { %1912 = vmatprep.subr.bf16.mxu1 %v2052_v0  ;;  %1906 = vmatprep.subr.bf16.mxu0 %v2052_v0 }
 0x9e9   :  { %1908 = vmatprep.mubr.msk.bf16.mxu0 %vm2053_vm0, %v2052_v0 }
 0x9ea   :  { %1901 = vmatmul.mubr.msk.bf16.vlgmr.msra.gmra.mxu1 %vm185_vm2, %v1238_v37 }
 0x9eb   :  { %1913 = vmatpush3.bf16.msra.mxu1 %v2162_v22  ;;  %1907 = vmatpush3.bf16.msra.mxu0 %v2169_v24  ;;  %v2051_v24 = vld [vmem:[%s2497_s3] ss:$0 sm:$0xff] }
 0x9ec   :  { %1914 = vmatprep.subr.bf16.mxu1 %v2052_v0  ;;  %1916 = vmatprep.mubr.msk.bf16.mxu1 %vm2053_vm0, %v2052_v0  ;;  %v170_v54 = vadd.f32 %v2051_v24, %v2217_v40 }
 0x9ed   :  { %1920 = vmatprep.subr.bf16.mxu0 %v2052_v0 }
 0x9ef   :  { %1915 = vmatpush3.bf16.msra.mxu1 %v2176_v25 }
 0xaa2   :  { %v1276_v21 = vpop.f32.mrf.mxu1 }
 0xaa3   :  { %v1277_v49 = vadd.f32 %v2224_v46, %v1276_v21 }
 0xaa4   :  { %v1886_v48 = vpop.f32.mrf.mxu1 }
 0xaa6   :  { %v1279_v50 = vpop.f32.mrf.mxu1  ;;  %v1320_v51 = vpop.f32.mrf.mxu0 }
 0xaa7   :  { %v1326_v36 = vadd.f32 %v1320_v51, %v1277_v49 }
 0xaa8   :  { %v1887_v52 = vpop.f32.mrf.mxu1  ;;  %v1894_v22 = vpop.f32.mrf.mxu0 }
 0xaa9   :  { %v1327_v55 = vmul.f32 0.5, %v1326_v36 }
 0xaaa   :  { %v1323_v56 = vpop.f32.mrf.mxu0  ;;  %v1377_v53 = vpop.f32.mrf.mxu1 }
 0xaab   :  { %v1383_v57 = vadd.f32 %v1377_v53, %v170_v54  ;;  %2025 = vtanh.f32 %v1327_v55 }
 0xaac   :  { %v1895_v25 = vpop.f32.mrf.mxu0  ;;  %v1902_v2 = vpop.f32.mrf.mxu1 }
 0xaad   :  { %v1384_v5 = vmul.f32 0.5, %v1383_v57  ;;  %2027 = vtanh.f32 %v1383_v57  ;;  %v1572_v57 = vlaneseq }
 0xaae   :  { %v1380_v7 = vpop.f32.mrf.mxu1 }
 0xaaf   :  { %2029 = vtanh.f32 %v1384_v5  ;;  %v1573_v25 = vand.u32 127, %v1572_v57 }
 0xab0   :  { %v1903_v58 = vpop.f32.mrf.mxu1  ;;  %2031 = vtanh.f32 %v1326_v36 }
 0xab1   :  { %vm1574_vm3 = vcmp.lt.s32.totalorder %v1573_v25, 3 }
 0xab8   :  { %v2026_v59 = vpop.eup %2025 }
 0xab9   :  { %v1329_v40 = vmul.f32 0.5, %v2026_v59 }
 0xaba   :  { %v2028_v61 = vpop.eup %2027 }
 0xabb   :  { %1391 = vrot.lane.b32.xlu0 %v2028_v61, %s2057_s4  ;;  %v1330_v3 = vadd.f32 0.5, %v1329_v40 }
 0xabc   :  { %v2030_v62 = vpop.eup %2029 }
 0xabd   :  { %v1386_v60 = vmul.f32 0.5, %v2030_v62  ;;  %v2032_v63 = vpop.eup %2031 }
 0xabf   :  { %1334 = vrot.lane.b32.xlu0 %v2032_v63, %s2057_s4  ;;  %v1387_v1 = vadd.f32 0.5, %v1386_v60 }
 0xac1   :  { %1389 = vrot.lane.b32.xlu1 %v1387_v1, %s2056_s11 }
 0xac3   :  { %1336 = vrot.lane.b32.xlu0 %v1330_v3, %s2055_s10 }
 0xac5   :  { %1332 = vrot.lane.b32.xlu1 %v1330_v3, %s2056_s11 }
 0xac9   :  { %1393 = vrot.lane.b32.xlu1 %v1387_v1, %s2055_s10 }
 0xb2d   :  { %v1392_v4 = vpop.permute.xlu0 %1391 }
 0xb2e   :  { %v1396_v10 = vmul.f32 %v1392_v4, %v1387_v1 }
 0xb31   :  { %v1335_v6 = vpop.permute.xlu0 %1334 }
 0xb32   :  { %v1339_v15 = vmul.f32 %v1335_v6, %v1330_v3 }
 0xb33   :  { %v1390_v9 = vpop.permute.xlu1 %1389 }
 0xb34   :  { %v1395_v11 = vmul.f32 %v1390_v9, %v2424_v29 }
 0xb35   :  { %v1337_v20 = vpop.permute.xlu0 %1336 }
 0xb36   :  { %v1397_v12 = vadd.f32 %v1396_v10, %v1395_v11 }
 0xb37   :  { %v1333_v13 = vpop.permute.xlu1 %1332 }
 0xb38   :  { %2033 = vtanh.f32 %v1397_v12  ;;  %v1338_v16 = vmul.f32 %v1333_v13, %v2428_v32 }
 0xb3a   :  { %v1340_v17 = vadd.f32 %v1339_v15, %v1338_v16 }
 0xb3b   :  { %v1394_v8 = vpop.permute.xlu1 %1393 }
 0xb3c   :  { %2035 = vtanh.f32 %v1340_v17 }
 0xb45   :  { %v2034_v18 = vpop.eup %2033 }
 0xb46   :  { %v1399_v38 = vmul.f32 %v2034_v18, %v1394_v8 }
 0xb48   :  { %v1400_v14 = vpack.c.bf16 %v1399_v38, %v1399_v38 }
 0xb49   :  { %v2036_v19 = vpop.eup %2035 }
 0xb4a   :  { %1909 = vmatmul.mubr.msk.bf16.vlgmr.msra.gmra.mxu0 %vm185_vm2, %v1400_v14  ;;  %v1342_v23 = vmul.f32 %v2036_v19, %v1337_v20 }
 0xb4b   :  { %1924 = vmatprep.mubr.msk.bf16.mxu0 %vm2053_vm0, %v2052_v0 }
 0xb4c   :  { %v1444_v26 = vpack.c.bf16 %v1342_v23, %v1342_v23 }
 0xb4e   :  { %1917 = vmatmul.mubr.msk.bf16.vlgmr.msra.gmra.mxu1 %vm185_vm2, %v1444_v26 }
 0xc0a   :  { %v1438_v27 = vpop.f32.mrf.mxu0 }
 0xc0b   :  { %v1439_v29 = vadd.f32 %v2224_v46, %v1438_v27  ;;  %v1945_v46 = vld [vmem:[%s2501_s7 + $0x8] sm:$0xff]  }
 0xc0c   :  { %v1910_v28 = vpop.f32.mrf.mxu0  ;;  %1921 = vmatpush3.bf16.msra.mxu0 %v1945_v46 }
 0xc0d   :  { %1922 = vmatprep.subr.bf16.mxu0 %v2052_v0  ;;  %v1634_v0 = vld [vmem:[%s2502_s8] ss:$0 sm:$0xff] }
 0xc0e   :  { %v1441_v41 = vpop.f32.mrf.mxu0  ;;  %v1482_v30 = vpop.f32.mrf.mxu1 }
 0xc0f   :  { %v1488_v31 = vadd.f32 %v1482_v30, %v1439_v29 }
 0xc10   :  { %v1911_v32 = vpop.f32.mrf.mxu0  ;;  %v1918_v33 = vpop.f32.mrf.mxu1  ;;  %1923 = vmatpush3.bf16.msra.mxu0 %v1946_v45 }
 0xc11   :  { %v1489_v34 = vmul.f32 0.5, %v1488_v31  ;;  %2037 = vtanh.f32 %v1488_v31 }
 0xc12   :  { %v1485_v35 = vpop.f32.mrf.mxu1 }
 0xc13   :  { %2039 = vtanh.f32 %v1489_v34 }
 0xc14   :  { %v1919_v37 = vpop.f32.mrf.mxu1 }
 0xc1e   :  { %v2038_v42 = vpop.eup %2037 }
 0xc1f   :  { %1496 = vrot.lane.b32.xlu0 %v2038_v42, %s2057_s4 }
 0xc20   :  { %v2040_v43 = vpop.eup %2039 }
 0xc21   :  { %v1491_v39 = vmul.f32 0.5, %v2040_v43 }
 0xc23   :  { %v1492_v44 = vadd.f32 0.5, %v1491_v39 }
 0xc25   :  { %1494 = vrot.lane.b32.xlu1 %v1492_v44, %s2056_s11 }
 0xc29   :  { %1498 = vrot.lane.b32.xlu1 %v1492_v44, %s2055_s10 }
 0xc91   :  { %v1497_v47 = vpop.permute.xlu0 %1496 }
 0xc92   :  { %v1501_v48 = vmul.f32 %v1497_v47, %v1492_v44 }
 0xc97   :  { %v1495_v21 = vpop.permute.xlu1 %1494 }
 0xc98   :  { %v1500_v49 = vmul.f32 %v1495_v21, %v1340_v17 }
 0xc9a   :  { %v1502_v50 = vadd.f32 %v1501_v48, %v1500_v49 }
 0xc9b   :  { %v1499_v36 = vpop.permute.xlu1 %1498 }
 0xc9c   :  { %2041 = vtanh.f32 %v1502_v50 }
 0xca9   :  { %v2042_v51 = vpop.eup %2041 }
 0xcaa   :  { %v1504_v52 = vmul.f32 %v2042_v51, %v1499_v36 }
 0xcac   :  { %v1505_v22 = vpack.c.bf16 %v1504_v52, %v1504_v52 }
 0xcae   :  { %1925 = vmatmul.mubr.msk.bf16.vlgmr.msra.gmra.mxu0 %vm185_vm2, %v1505_v22 }
 0xd6e   :  { %v1566_v24 = vpop.f32.mrf.mxu0 }
 0xd6f   :  { %v1567_v54 = vadd.f32 %v1634_v0, %v1566_v24 }
 0xd70   :  { %v1926_v55 = vpop.f32.mrf.mxu0 }
 0xd71   :  { %2043 = vtanh.f32 %v1567_v54  ;;  %v1575_v59 = vmul.f32 0.5, %v1567_v54 }
 0xd72   :  { %v1569_v56 = vpop.f32.mrf.mxu0 }
 0xd73   :  { %2045 = vtanh.f32 %v1575_v59 }
 0xd74   :  { %v1927_v53 = vpop.f32.mrf.mxu0 }
 0xd7e   :  { %v2044_v2 = vpop.eup %2043 }
 0xd7f   :  { %v1580_v5 = vsel %vm1574_vm3, 0.0, %v2044_v2 }
 0xd80   :  { %v1581_v7 = vmul.f32 %v1580_v5, %v1580_v5  ;;  %v2046_v60 = vpop.eup %2045 }
 0xd81   :  { %v1577_v40 = vmul.f32 0.5, %v2046_v60 }
 0xd82   :  { %v1583_v58 = vsel %vm1582_vm4, %v1581_v7, 0.0 }
 0xd83   :  { %1584 = vadd.xlane.f32.xlu0 %v1583_v58  ;;  %v1578_v1 = vadd.f32 0.5, %v1577_v40 }
 0xe0c   :  { %v1585_v61 = vpop.xlane.xlu0 %1584 }
 0xe0d   :  { %v1586_v62 = vmax.f32 %v1585_v61, 1e-24 }
 0xe0f   :  { %2047 = vrsqrt.f32 %v1586_v62 }
 0xe1c   :  { %v2048_v63 = vpop.eup %2047 }
 0xe1d   :  { %v1588_v3 = vmul.f32 %v2048_v63, %v2044_v2 }
 0xe1f   :  { %v1589_v4 = vsel %vm1574_vm3, %v1578_v1, %v1588_v3 }
 0xe20   :  { %1590 = vst.msk [vmem:[%s2503_s9] sm:$0xff] %vm1582_vm4, %v1589_v4 }

</bundles_post_ra>
